<compile_context>
chip_gen: v6e
topology: v6e:2x2x1
jax: 0.10.0
libtpu: 0.0.40
codegen_flags: <defaults>
</compile_context>

<pallas_src>
import functools

import jax
import jax.numpy as jnp
from jax import lax
from jax.experimental import pallas as pl
from jax.experimental.pallas import tpu as pltpu

_BN_EPS = 1e-5
_LANE = 128      # TPU lane width; all packed parameter rows padded to this
_SUBLANE = 8


def _ceil_to(n, m):
    return (n + m - 1) // m * m


# ----------------------------------------------------------------------------- fused kernel
def _disc_fused_kernel(meta, x_ref, y_ref, p_ref, o_ref):
    """Whole Discriminator forward in one gridless kernel.

    All parameters live in ONE packed (rows, 128) f32 buffer `p_ref`
    (single DMA); static offsets in `meta` carve out each tensor.
    Intermediate activations never leave vregs/VMEM.
    """
    x = x_ref[...]
    y = y_ref[...]

    def row(off):                       # (1, LANE) parameter row
        return p_ref[off:off + 1, :]

    def block(off, rows):               # (rows, LANE) weight block
        return p_ref[off:off + rows, :]

    def bn_relu(z, g_off, b_off):
        # Training-mode BatchNorm1d: batch mean, biased variance, eps=1e-5.
        # Affine folded into the normalization scale (saves a (B,H) multiply).
        mean = jnp.mean(z, axis=0, keepdims=True)
        centred = z - mean
        var = jnp.mean(centred * centred, axis=0, keepdims=True)
        scale = row(g_off) * lax.rsqrt(var + _BN_EPS)        # (1, LANE)
        return jnp.maximum(centred * scale + row(b_off), 0.0)

    # input layer: cat([x, y], 1) @ W0  ==  x @ W0[:X] + y @ W0[X:]
    # (linear bias omitted: it cancels exactly under train-mode BN)
    w0x_off, w0x_rows = meta["w0x"]
    w0y_off, w0y_rows = meta["w0y"]
    z = (jnp.dot(x, block(w0x_off, w0x_rows), preferred_element_type=jnp.float32)
         + jnp.dot(y, block(w0y_off, w0y_rows), preferred_element_type=jnp.float32))
    h = bn_relu(z, meta["gamma0"], meta["beta0"])

    # hidden layers: Linear -> BN -> ReLU -> Dropout(identity)
    for (w_off, w_rows), g_off, b_off in meta["hidden"]:
        z = jnp.dot(h, block(w_off, w_rows), preferred_element_type=jnp.float32)
        h = bn_relu(z, g_off, b_off)
        # TODO(synk): Dropout applied as identity (see header).

    # final layer: Linear (bias kept — no BN follows) -> Sigmoid
    out_dim = meta["out_dim"]
    bf = p_ref[meta["bf"]:meta["bf"] + 1, 0:out_dim]          # (1, out_dim)
    if out_dim == 1:
        # (H_last, 1) matmul -> VPU multiply + lane reduce; skips an MXU
        # push/pop that would produce a single almost-empty output lane.
        z = jnp.sum(h * row(meta["wfT"]), axis=1, keepdims=True) + bf
    else:
        wf_t = block(meta["wfT"], out_dim)                    # (out_dim, LANE)
        z = lax.dot_general(h, wf_t, (((1,), (1,)), ((), ())),
                            preferred_element_type=jnp.float32) + bf
    o_ref[...] = jax.nn.sigmoid(z)


# ----------------------------------------------------------------------------- parameter init / packing
def _torch_linear_init(key, in_dim, out_dim):
    """PyTorch nn.Linear default init: U(-1/sqrt(in), 1/sqrt(in))."""
    kw, kb = jax.random.split(key)
    bound = 1.0 / float(in_dim) ** 0.5
    w = jax.random.uniform(kw, (out_dim, in_dim), jnp.float32, -bound, bound)
    b = jax.random.uniform(kb, (out_dim,), jnp.float32, -bound, bound)
    return w, b


def init_discriminator_params(key, x_dim, y_dim, out_dim, dims_h):
    """Build ONE packed, lane-padded (rows, 128) parameter buffer plus static
    layout metadata.  Column paddings (and gamma/beta paddings) are zero, so
    padded activation columns stay exactly 0 through the whole network."""
    assert max(list(dims_h) + [out_dim]) <= _LANE
    in_dim = x_dim + y_dim
    n_hidden = len(dims_h) - 1
    keys = jax.random.split(key, n_hidden + 2)

    blocks = []
    cursor = 0
    meta = {"lane": _LANE, "out_dim": out_dim,
            "x_dim": x_dim, "y_dim": y_dim, "dims_h": tuple(dims_h)}

    def add(mat, pad_rows=None):
        nonlocal cursor
        r, c = mat.shape
        pr = pad_rows if pad_rows is not None else _ceil_to(r, _SUBLANE)
        blk = jnp.zeros((pr, _LANE), jnp.float32).at[:r, :c].set(mat)
        blocks.append(blk)
        off = cursor
        cursor += pr
        return off

    # input layer (bias dropped: cancels exactly under train-mode BN)
    w0, _b0_unused = _torch_linear_init(keys[0], in_dim, dims_h[0])
    w0_t = w0.T                                   # (in_dim, H0), pre-transposed
    meta["w0x"] = (add(w0_t[:x_dim]), x_dim)
    meta["w0y"] = (add(w0_t[x_dim:]), y_dim)
    meta["gamma0"] = add(jnp.ones((1, dims_h[0]), jnp.float32))
    meta["beta0"] = add(jnp.zeros((1, dims_h[0]), jnp.float32))

    # hidden layers: weights row-padded to LANE so every dot has K = 128
    hidden = []
    for li in range(n_hidden):
        w, _b_unused = _torch_linear_init(keys[li + 1], dims_h[li], dims_h[li + 1])
        w_off = add(w.T, pad_rows=_LANE)
        g_off = add(jnp.ones((1, dims_h[li + 1]), jnp.float32))
        b_off = add(jnp.zeros((1, dims_h[li + 1]), jnp.float32))
        hidden.append(((w_off, _LANE), g_off, b_off))
    meta["hidden"] = tuple(hidden)

    # final layer: weight stored as (out_dim, H_last) rows; bias kept
    wf, bf = _torch_linear_init(keys[-1], dims_h[-1], out_dim)
    meta["wfT"] = add(wf)
    meta["bf"] = add(bf.reshape(1, out_dim))

    packed = jnp.concatenate(blocks, axis=0)
    return packed, meta


# ----------------------------------------------------------------------------- forward wrapper
def make_discriminator_forward(meta):
    kernel = functools.partial(_disc_fused_kernel, meta)
    vmem = pl.BlockSpec(memory_space=pltpu.MemorySpace.VMEM)

    @jax.jit
    def forward(packed, x, y):
        return pl.pallas_call(
            kernel,
            out_shape=jax.ShapeDtypeStruct((x.shape[0], meta["out_dim"]), jnp.float32),
            in_specs=[vmem, vmem, vmem],
            out_specs=vmem,
        )(x, y, packed)

    return forward


# ----------------------------------------------------------------------------- pure-JAX reference
def _reference_forward(packed, meta, x, y):
    dims_h = meta["dims_h"]
    x_dim, y_dim, out_dim = meta["x_dim"], meta["y_dim"], meta["out_dim"]

    def bn_relu(z, g, b):
        mean = jnp.mean(z, axis=0, keepdims=True)
        var = jnp.mean((z - mean) ** 2, axis=0, keepdims=True)
        return jnp.maximum((z - mean) / jnp.sqrt(var + _BN_EPS) * g + b, 0.0)

    h = jnp.concatenate([x, y], axis=1)
    w0x_off, _ = meta["w0x"]
    w0y_off, _ = meta["w0y"]
    w0 = jnp.concatenate([packed[w0x_off:w0x_off + x_dim, :dims_h[0]],
                          packed[w0y_off:w0y_off + y_dim, :dims_h[0]]], axis=0)
    h = bn_relu(h @ w0,
                packed[meta["gamma0"]:meta["gamma0"] + 1, :dims_h[0]],
                packed[meta["beta0"]:meta["beta0"] + 1, :dims_h[0]])

    for li, ((w_off, _), g_off, b_off) in enumerate(meta["hidden"]):
        din, dout = dims_h[li], dims_h[li + 1]
        w = packed[w_off:w_off + din, :dout]
        h = bn_relu(h @ w,
                    packed[g_off:g_off + 1, :dout],
                    packed[b_off:b_off + 1, :dout])

    wf = packed[meta["wfT"]:meta["wfT"] + out_dim, :dims_h[-1]]   # (out, H_last)
    bf = packed[meta["bf"]:meta["bf"] + 1, :out_dim]
    return jax.nn.sigmoid(h @ wf.T + bf)


# ----------------------------------------------------------------------------- main
if __name__ == "__main__":
    key = jax.random.PRNGKey(0)
    k_x, k_y, k_p = jax.random.split(key, 3)

    B = 128          # >= 128 rows per call: fills MXU rows, amortizes launch/DMA overhead
    X_DIM = 16       # data features
    Y_DIM = 8        # condition features
    dims_h = [32, 64, 32]
    OUT_DIM = 1

    x = jax.random.normal(k_x, (B, X_DIM), jnp.float32)
    y = jax.random.normal(k_y, (B, Y_DIM), jnp.float32)
    packed, meta = init_discriminator_params(k_p, X_DIM, Y_DIM, OUT_DIM, dims_h)

    forward = make_discriminator_forward(meta)
    out = jax.block_until_ready(forward(packed, x, y))

    assert out.shape == (B, OUT_DIM), out.shape
    assert bool(jnp.all(jnp.isfinite(out)))
    assert bool(jnp.all((out >= 0.0) & (out <= 1.0)))

    ref = _reference_forward(packed, meta, x, y)
    max_err = float(jnp.max(jnp.abs(out - ref)))
    assert bool(jnp.allclose(out, ref, atol=1e-2, rtol=1e-2)), (
        f"kernel vs reference mismatch: max abs err {max_err}")

    print("KERNEL_OK")
</pallas_src>

<mosaic_0001>
module attributes {stable_mosaic.version = 11 : i64} {
  func.func @_disc_fused_kernel(%arg0: memref<128x16xf32, #tpu.memory_space<vmem>>, %arg1: memref<128x8xf32, #tpu.memory_space<vmem>>, %arg2: memref<344x128xf32, #tpu.memory_space<vmem>>, %arg3: memref<128x1xf32, #tpu.memory_space<vmem>>) attributes {dimension_semantics = [], scalar_prefetch = 0 : i64, scratch_operands = 0 : i64, tpu.core_type = #tpu.core_type<tc>} {
    %c0 = arith.constant 0 : index
    %c0_0 = arith.constant 0 : index
    %0 = vector.load %arg0[%c0, %c0_0] : memref<128x16xf32, #tpu.memory_space<vmem>>, vector<128x16xf32>
    %c0_1 = arith.constant 0 : index
    %c0_2 = arith.constant 0 : index
    %1 = vector.load %arg1[%c0_1, %c0_2] : memref<128x8xf32, #tpu.memory_space<vmem>>, vector<128x8xf32>
    %c0_3 = arith.constant 0 : index
    %c0_4 = arith.constant 0 : index
    %2 = vector.load %arg2[%c0_3, %c0_4] : memref<344x128xf32, #tpu.memory_space<vmem>>, vector<16x128xf32>
    %cst = arith.constant dense<0.000000e+00> : vector<128x128xf32>
    %3 = tpu.matmul %0, %2, %cst {dimension_numbers = #tpu.dot_dimension_numbers<[1], [0], [0], [1], [0, 0, 1, 1], [], []>} : vector<128x16xf32>, vector<16x128xf32>, vector<128x128xf32> -> vector<128x128xf32>
    %c16 = arith.constant 16 : index
    %c0_5 = arith.constant 0 : index
    %4 = vector.load %arg2[%c16, %c0_5] : memref<344x128xf32, #tpu.memory_space<vmem>>, vector<8x128xf32>
    %cst_6 = arith.constant dense<0.000000e+00> : vector<128x128xf32>
    %5 = tpu.matmul %1, %4, %cst_6 {dimension_numbers = #tpu.dot_dimension_numbers<[1], [0], [0], [1], [0, 0, 1, 1], [], []>} : vector<128x8xf32>, vector<8x128xf32>, vector<128x128xf32> -> vector<128x128xf32>
    %6 = arith.addf %3, %5 : vector<128x128xf32>
    %cst_7 = arith.constant dense<0.000000e+00> : vector<128xf32>
    %7 = vector.multi_reduction <add>, %6, %cst_7 [0] : vector<128x128xf32> to vector<128xf32>
    %8 = vector.shape_cast %7 : vector<128xf32> to vector<1x128xf32>
    %cst_8 = arith.constant 1.280000e+02 : f32
    %9 = vector.broadcast %cst_8 : f32 to vector<1x128xf32>
    %10 = arith.divf %8, %9 : vector<1x128xf32>
    %11 = vector.broadcast %10 : vector<1x128xf32> to vector<128x128xf32>
    %12 = arith.subf %6, %11 : vector<128x128xf32>
    %13 = arith.mulf %12, %12 : vector<128x128xf32>
    %cst_9 = arith.constant dense<0.000000e+00> : vector<128xf32>
    %14 = vector.multi_reduction <add>, %13, %cst_9 [0] : vector<128x128xf32> to vector<128xf32>
    %15 = vector.shape_cast %14 : vector<128xf32> to vector<1x128xf32>
    %cst_10 = arith.constant 1.280000e+02 : f32
    %16 = vector.broadcast %cst_10 : f32 to vector<1x128xf32>
    %17 = arith.divf %15, %16 : vector<1x128xf32>
    %c24 = arith.constant 24 : index
    %c0_11 = arith.constant 0 : index
    %18 = vector.load %arg2[%c24, %c0_11] : memref<344x128xf32, #tpu.memory_space<vmem>>, vector<1x128xf32>
    %cst_12 = arith.constant 9.99999974E-6 : f32
    %19 = vector.broadcast %cst_12 : f32 to vector<1x128xf32>
    %20 = arith.addf %17, %19 : vector<1x128xf32>
    %21 = math.rsqrt %20 : vector<1x128xf32>
    %22 = arith.mulf %18, %21 : vector<1x128xf32>
    %23 = vector.broadcast %22 : vector<1x128xf32> to vector<128x128xf32>
    %24 = arith.mulf %12, %23 : vector<128x128xf32>
    %c32 = arith.constant 32 : index
    %c0_13 = arith.constant 0 : index
    %25 = vector.load %arg2[%c32, %c0_13] : memref<344x128xf32, #tpu.memory_space<vmem>>, vector<1x128xf32>
    %26 = vector.broadcast %25 : vector<1x128xf32> to vector<128x128xf32>
    %27 = arith.addf %24, %26 : vector<128x128xf32>
    %cst_14 = arith.constant 0.000000e+00 : f32
    %28 = vector.broadcast %cst_14 : f32 to vector<128x128xf32>
    %29 = arith.maximumf %27, %28 : vector<128x128xf32>
    %c40 = arith.constant 40 : index
    %c0_15 = arith.constant 0 : index
    %30 = vector.load %arg2[%c40, %c0_15] : memref<344x128xf32, #tpu.memory_space<vmem>>, vector<128x128xf32>
    %cst_16 = arith.constant dense<0.000000e+00> : vector<128x128xf32>
    %31 = tpu.matmul %29, %30, %cst_16 {dimension_numbers = #tpu.dot_dimension_numbers<[1], [0], [0], [1], [0, 0, 1, 1], [], []>} : vector<128x128xf32>, vector<128x128xf32>, vector<128x128xf32> -> vector<128x128xf32>
    %cst_17 = arith.constant dense<0.000000e+00> : vector<128xf32>
    %32 = vector.multi_reduction <add>, %31, %cst_17 [0] : vector<128x128xf32> to vector<128xf32>
    %33 = vector.shape_cast %32 : vector<128xf32> to vector<1x128xf32>
    %cst_18 = arith.constant 1.280000e+02 : f32
    %34 = vector.broadcast %cst_18 : f32 to vector<1x128xf32>
    %35 = arith.divf %33, %34 : vector<1x128xf32>
    %36 = vector.broadcast %35 : vector<1x128xf32> to vector<128x128xf32>
    %37 = arith.subf %31, %36 : vector<128x128xf32>
    %38 = arith.mulf %37, %37 : vector<128x128xf32>
    %cst_19 = arith.constant dense<0.000000e+00> : vector<128xf32>
    %39 = vector.multi_reduction <add>, %38, %cst_19 [0] : vector<128x128xf32> to vector<128xf32>
    %40 = vector.shape_cast %39 : vector<128xf32> to vector<1x128xf32>
    %cst_20 = arith.constant 1.280000e+02 : f32
    %41 = vector.broadcast %cst_20 : f32 to vector<1x128xf32>
    %42 = arith.divf %40, %41 : vector<1x128xf32>
    %c168 = arith.constant 168 : index
    %c0_21 = arith.constant 0 : index
    %43 = vector.load %arg2[%c168, %c0_21] : memref<344x128xf32, #tpu.memory_space<vmem>>, vector<1x128xf32>
    %cst_22 = arith.constant 9.99999974E-6 : f32
    %44 = vector.broadcast %cst_22 : f32 to vector<1x128xf32>
    %45 = arith.addf %42, %44 : vector<1x128xf32>
    %46 = math.rsqrt %45 : vector<1x128xf32>
    %47 = arith.mulf %43, %46 : vector<1x128xf32>
    %48 = vector.broadcast %47 : vector<1x128xf32> to vector<128x128xf32>
    %49 = arith.mulf %37, %48 : vector<128x128xf32>
    %c176 = arith.constant 176 : index
    %c0_23 = arith.constant 0 : index
    %50 = vector.load %arg2[%c176, %c0_23] : memref<344x128xf32, #tpu.memory_space<vmem>>, vector<1x128xf32>
    %51 = vector.broadcast %50 : vector<1x128xf32> to vector<128x128xf32>
    %52 = arith.addf %49, %51 : vector<128x128xf32>
    %cst_24 = arith.constant 0.000000e+00 : f32
    %53 = vector.broadcast %cst_24 : f32 to vector<128x128xf32>
    %54 = arith.maximumf %52, %53 : vector<128x128xf32>
    %c184 = arith.constant 184 : index
    %c0_25 = arith.constant 0 : index
    %55 = vector.load %arg2[%c184, %c0_25] : memref<344x128xf32, #tpu.memory_space<vmem>>, vector<128x128xf32>
    %cst_26 = arith.constant dense<0.000000e+00> : vector<128x128xf32>
    %56 = tpu.matmul %54, %55, %cst_26 {dimension_numbers = #tpu.dot_dimension_numbers<[1], [0], [0], [1], [0, 0, 1, 1], [], []>} : vector<128x128xf32>, vector<128x128xf32>, vector<128x128xf32> -> vector<128x128xf32>
    %cst_27 = arith.constant dense<0.000000e+00> : vector<128xf32>
    %57 = vector.multi_reduction <add>, %56, %cst_27 [0] : vector<128x128xf32> to vector<128xf32>
    %58 = vector.shape_cast %57 : vector<128xf32> to vector<1x128xf32>
    %cst_28 = arith.constant 1.280000e+02 : f32
    %59 = vector.broadcast %cst_28 : f32 to vector<1x128xf32>
    %60 = arith.divf %58, %59 : vector<1x128xf32>
    %61 = vector.broadcast %60 : vector<1x128xf32> to vector<128x128xf32>
    %62 = arith.subf %56, %61 : vector<128x128xf32>
    %63 = arith.mulf %62, %62 : vector<128x128xf32>
    %cst_29 = arith.constant dense<0.000000e+00> : vector<128xf32>
    %64 = vector.multi_reduction <add>, %63, %cst_29 [0] : vector<128x128xf32> to vector<128xf32>
    %65 = vector.shape_cast %64 : vector<128xf32> to vector<1x128xf32>
    %cst_30 = arith.constant 1.280000e+02 : f32
    %66 = vector.broadcast %cst_30 : f32 to vector<1x128xf32>
    %67 = arith.divf %65, %66 : vector<1x128xf32>
    %c312 = arith.constant 312 : index
    %c0_31 = arith.constant 0 : index
    %68 = vector.load %arg2[%c312, %c0_31] : memref<344x128xf32, #tpu.memory_space<vmem>>, vector<1x128xf32>
    %cst_32 = arith.constant 9.99999974E-6 : f32
    %69 = vector.broadcast %cst_32 : f32 to vector<1x128xf32>
    %70 = arith.addf %67, %69 : vector<1x128xf32>
    %71 = math.rsqrt %70 : vector<1x128xf32>
    %72 = arith.mulf %68, %71 : vector<1x128xf32>
    %73 = vector.broadcast %72 : vector<1x128xf32> to vector<128x128xf32>
    %74 = arith.mulf %62, %73 : vector<128x128xf32>
    %c320 = arith.constant 320 : index
    %c0_33 = arith.constant 0 : index
    %75 = vector.load %arg2[%c320, %c0_33] : memref<344x128xf32, #tpu.memory_space<vmem>>, vector<1x128xf32>
    %76 = vector.broadcast %75 : vector<1x128xf32> to vector<128x128xf32>
    %77 = arith.addf %74, %76 : vector<128x128xf32>
    %cst_34 = arith.constant 0.000000e+00 : f32
    %78 = vector.broadcast %cst_34 : f32 to vector<128x128xf32>
    %79 = arith.maximumf %77, %78 : vector<128x128xf32>
    %c336 = arith.constant 336 : index
    %c0_35 = arith.constant 0 : index
    %80 = vector.load %arg2[%c336, %c0_35] : memref<344x128xf32, #tpu.memory_space<vmem>>, vector<1x1xf32>
    %c328 = arith.constant 328 : index
    %c0_36 = arith.constant 0 : index
    %81 = vector.load %arg2[%c328, %c0_36] : memref<344x128xf32, #tpu.memory_space<vmem>>, vector<1x128xf32>
    %82 = vector.broadcast %81 : vector<1x128xf32> to vector<128x128xf32>
    %83 = arith.mulf %79, %82 : vector<128x128xf32>
    %cst_37 = arith.constant dense<0.000000e+00> : vector<128xf32>
    %84 = vector.multi_reduction <add>, %83, %cst_37 [1] : vector<128x128xf32> to vector<128xf32>
    %85 = vector.shape_cast %84 : vector<128xf32> to vector<128x1xf32>
    %86 = vector.broadcast %80 : vector<1x1xf32> to vector<128x1xf32>
    %87 = arith.addf %85, %86 : vector<128x1xf32>
    %88 = arith.negf %87 : vector<128x1xf32>
    %89 = math.exp %88 : vector<128x1xf32>
    %cst_38 = arith.constant 1.000000e+00 : f32
    %90 = vector.broadcast %cst_38 : f32 to vector<128x1xf32>
    %91 = arith.addf %90, %89 : vector<128x1xf32>
    %92 = arith.divf %90, %91 : vector<128x1xf32>
    %c0_39 = arith.constant 0 : index
    %c0_40 = arith.constant 0 : index
    %93 = vector.load %arg3[%c0_39, %c0_40] : memref<128x1xf32, #tpu.memory_space<vmem>>, vector<128x1xf32>
    tpu.vector_store %arg3[%c0_39, %c0_40], %92 {strides = array<i32>} : memref<128x1xf32, #tpu.memory_space<vmem>>, vector<128x1xf32>,
    return
  }
}

</mosaic_0001>

<bundles_post_ra>
// kernel: forward.1
= control target key start
LH: loop header
LB: loop body
LE: loop exit
PB: predicated region body
PF: predicated region fallthrough
CT: control target
= control target key end

     0   :  { %8 = vsyncpa [#allocation3], 0  ;;  %s1790_s12 = smov [#allocation2]   ;;  %s2255_s0 = inlined_call_operand.vmem [shape: f32[128,16], index: 0, kind: input, shape index: {}]   ;;  %s2256_s1 = inlined_call_operand.vmem [shape: f32[128,8], index: 1, kind: input, shape index: {}]   ;;  %s2257_s2 = inlined_call_operand.hbm [shape: f32[344,128], index: 2, kind: input, shape index: {}]   ;;  %s2258_s3 = inlined_call_operand.vmem [shape: f32[128,1], index: 3, kind: output, shape index: {}]  }
   0x1   :  { %s18_s13 = sshll.u32 %s1790_s12, 4  ;;  %s19_s13 = int_to_ptr.vmem [resolvable:$true] %s18_s13 }
   0x2   :  { %s1776_s14 = scalar_lea.vmem %s19_s13, 5504  ;;  %p1781_p1 = scmp.lt.s32.totalorder %s19_s13, %s19_s13 }
   0x3   :  { %p1777_p0 = scmp.ne.s32.totalorder %s19_s13, %s1776_s14  ;;  %p1782_p2 = scmp.lt.s32.totalorder %s1776_s14, %s1776_s14 }
   0x5   :  { %p1783_p3 = por %p1782_p2, %p1781_p1 }
   0x7   :  { %p1784_p4 = pnand %p1783_p3, %p1777_p0 }
   0x9   :  { %1787 = shalt.err (!%p1784_p4)
}
   0xa   :  { %s1791_s15 = smov 128   ;;  %s1792_s16 = smov 8  }
   0xb   :  { %24 = dma.hbm_to_vmem [thread:$0]  %s2257_s2, 5504, %s19_s13, [#allocation3], %s1791_s15, %s1791_s15, %s1792_s16  }
   0xc   :  { %1788 = dma.done.wait [#allocation3], 5504  }
   0xd   :  { %1789 = vsyncadd [#allocation3], 4294961792  ;;  %vm63_vm0 = vcmask 64512   ;;  %v62_v0 = vld [vmem:[#allocation2 + $0x10] sm:$0xff]  ;;  %v61_v1 = vld [vmem:[#allocation2 + $0x8] sm:$0xff]  ;;  %vm257_vm1 = vcmask 130048  }
   0xe   :  { %v44_v2 = vld [vmem:[%s2256_s1] sm:$0xff]  ;;  %1529 = vmatprep.subr.mxu0 %v62_v0  ;;  %1555 = vmatprep.subr.mxu1 %v61_v1  ;;  %v45_v3 = vld [vmem:[%s2256_s1 + $0x8] sm:$0xff]  ;;  %v46_v6 = vld [vmem:[%s2256_s1 + $0x10] sm:$0xff]  ;;  %vm1355_vm2 = vcmask 7168  }
   0xf   :  { %v60_v4 = vld [vmem:[#allocation2] sm:$0xff]  ;;  %1530 = vmatpush3.msra.mxu0 %v62_v0  ;;  %1531 = vmatprep.mubr.msk.f32.mxu0 %vm63_vm0, %v44_v2  ;;  %v29_v7 = vld [vmem:[%s2255_s0 + $0x8] sm:$0xff]  ;;  %v47_v8 = vld [vmem:[%s2256_s1 + $0x18] sm:$0xff] }
  0x10   :  { %v28_v5 = vld [vmem:[%s2255_s0] sm:$0xff]  ;;  %1556 = vmatpush3.msra.mxu1 %v61_v1  ;;  %1532 = vmatmul.mubr.msk.f32.vlgmr.msra.gmra.mxu0 %vm63_vm0, %v45_v3  ;;  %v30_v9 = vld [vmem:[%s2255_s0 + $0x10] sm:$0xff]  ;;  %v31_v11 = vld [vmem:[%s2255_s0 + $0x18] sm:$0xff] }
  0x11   :  { %1557 = vmatprep.subr.mxu1 %v60_v4  ;;  %1559 = vmatprep.mubr.msk.f32.mxu1 %vm257_vm1, %v28_v5  ;;  %v48_v10 = vld [vmem:[%s2256_s1 + $0x20] sm:$0xff]  ;;  %v49_v12 = vld [vmem:[%s2256_s1 + $0x28] sm:$0xff]  ;;  %v50_v14 = vld [vmem:[%s2256_s1 + $0x30] sm:$0xff] }
  0x12   :  { %1558 = vmatpush3.msra.mxu1 %v60_v4  ;;  %1534 = vmatprep.mubr.msk.f32.mxu0 %vm63_vm0, %v46_v6  ;;  %v32_v13 = vld [vmem:[%s2255_s0 + $0x20] sm:$0xff]  ;;  %v33_v15 = vld [vmem:[%s2255_s0 + $0x28] sm:$0xff]  ;;  %v51_v16 = vld [vmem:[%s2256_s1 + $0x38] sm:$0xff] }
  0x13   :  { %1560 = vmatmul.mubr.msk.f32.vlgmr.msra.gmra.mxu1 %vm257_vm1, %v29_v7  ;;  %v34_v17 = vld [vmem:[%s2255_s0 + $0x30] sm:$0xff]  ;;  %v52_v18 = vld [vmem:[%s2256_s1 + $0x40] sm:$0xff]  ;;  %v35_v19 = vld [vmem:[%s2255_s0 + $0x38] sm:$0xff] }
  0x14   :  { %1535 = vmatmul.mubr.msk.f32.gmra.mxu0 %vm63_vm0, %v47_v8  ;;  %1562 = vmatprep.mubr.msk.f32.mxu1 %vm257_vm1, %v30_v9  ;;  %v53_v20 = vld [vmem:[%s2256_s1 + $0x48] sm:$0xff]  ;;  %v36_v21 = vld [vmem:[%s2255_s0 + $0x40] sm:$0xff]  ;;  %v54_v22 = vld [vmem:[%s2256_s1 + $0x50] sm:$0xff] }
  0x15   :  { %1537 = vmatprep.mubr.msk.f32.mxu0 %vm63_vm0, %v48_v10  ;;  %v37_v23 = vld [vmem:[%s2255_s0 + $0x48] sm:$0xff]  ;;  %v55_v24 = vld [vmem:[%s2256_s1 + $0x58] sm:$0xff]  ;;  %v38_v25 = vld [vmem:[%s2255_s0 + $0x50] sm:$0xff] }
  0x16   :  { %v56_v26 = vld [vmem:[%s2256_s1 + $0x60] sm:$0xff]  ;;  %v39_v27 = vld [vmem:[%s2255_s0 + $0x58] sm:$0xff]  ;;  %v57_v28 = vld [vmem:[%s2256_s1 + $0x68] sm:$0xff] }
  0x17   :  { %1563 = vmatmul.mubr.msk.f32.gmra.mxu1 %vm257_vm1, %v31_v11  ;;  %v40_v29 = vld [vmem:[%s2255_s0 + $0x60] sm:$0xff]  ;;  %v58_v30 = vld [vmem:[%s2256_s1 + $0x70] sm:$0xff]  ;;  %v41_v31 = vld [vmem:[%s2255_s0 + $0x68] sm:$0xff] }
  0x18   :  { %1538 = vmatmul.mubr.msk.f32.gmra.mxu0 %vm63_vm0, %v49_v12  ;;  %1565 = vmatprep.mubr.msk.f32.mxu1 %vm257_vm1, %v32_v13  ;;  %v59_v32 = vld [vmem:[%s2256_s1 + $0x78] sm:$0xff]  ;;  %v42_v33 = vld [vmem:[%s2255_s0 + $0x70] sm:$0xff]  ;;  %v604_v35 = vld [vmem:[#allocation2 + $0xa0] sm:$0xff] }
  0x19   :  { %1540 = vmatprep.mubr.msk.f32.mxu0 %vm63_vm0, %v50_v14  ;;  %v43_v34 = vld [vmem:[%s2255_s0 + $0x78] sm:$0xff]  ;;  %1583 = vmatprep.subr.mxu0 %v604_v35  ;;  %v602_v37 = vld [vmem:[#allocation2 + $0x90] sm:$0xff]  ;;  %v601_v38 = vld [vmem:[#allocation2 + $0x88] sm:$0xff] }
  0x1a   :  { %1584 = vmatpush3.msra.mxu0 %v604_v35  ;;  %v603_v36 = vld [vmem:[#allocation2 + $0x98] sm:$0xff]  ;;  %v600_v39 = vld [vmem:[#allocation2 + $0x80] sm:$0xff]  ;;  %v598_v41 = vld [vmem:[#allocation2 + $0x70] sm:$0xff] }
  0x1b   :  { %1566 = vmatmul.mubr.msk.f32.gmra.mxu1 %vm257_vm1, %v33_v15  ;;  %1585 = vmatprep.subr.mxu0 %v603_v36  ;;  %v599_v40 = vld [vmem:[#allocation2 + $0x78] sm:$0xff]  ;;  %v597_v42 = vld [vmem:[#allocation2 + $0x68] sm:$0xff]  ;;  %v596_v43 = vld [vmem:[#allocation2 + $0x60] sm:$0xff] }
  0x1c   :  { %1541 = vmatmul.mubr.msk.f32.gmra.mxu0 %vm63_vm0, %v51_v16  ;;  %1568 = vmatprep.mubr.msk.f32.mxu1 %vm257_vm1, %v34_v17  ;;  %v595_v44 = vld [vmem:[#allocation2 + $0x58] sm:$0xff]  ;;  %v594_v45 = vld [vmem:[#allocation2 + $0x50] sm:$0xff]  ;;  %v593_v46 = vld [vmem:[#allocation2 + $0x48] sm:$0xff] }
  0x1d   :  { %1543 = vmatprep.mubr.msk.f32.mxu0 %vm63_vm0, %v52_v18  ;;  %1586 = vmatpush3.msra.mxu0 %v603_v36  ;;  %v592_v47 = vld [vmem:[#allocation2 + $0x40] sm:$0xff]  ;;  %v591_v48 = vld [vmem:[#allocation2 + $0x38] sm:$0xff]  ;;  %v590_v49 = vld [vmem:[#allocation2 + $0x30] sm:$0xff] }
  0x1e   :  { %1587 = vmatprep.subr.mxu0 %v602_v37  ;;  %v589_v51 = vld [vmem:[#allocation2 + $0x28] sm:$0xff] }
  0x1f   :  { %1569 = vmatmul.mubr.msk.f32.gmra.mxu1 %vm257_vm1, %v35_v19  ;;  %1588 = vmatpush3.msra.mxu0 %v602_v37 }
  0x20   :  { %1544 = vmatmul.mubr.msk.f32.gmra.mxu0 %vm63_vm0, %v53_v20  ;;  %1571 = vmatprep.mubr.msk.f32.mxu1 %vm257_vm1, %v36_v21 }
  0x21   :  { %1546 = vmatprep.mubr.msk.f32.mxu0 %vm63_vm0, %v54_v22  ;;  %1589 = vmatprep.subr.mxu0 %v601_v38 }
  0x22   :  { %1590 = vmatpush3.msra.mxu0 %v601_v38 }
  0x23   :  { %1572 = vmatmul.mubr.msk.f32.gmra.mxu1 %vm257_vm1, %v37_v23  ;;  %1591 = vmatprep.subr.mxu0 %v600_v39 }
  0x24   :  { %1547 = vmatmul.mubr.msk.f32.gmra.mxu0 %vm63_vm0, %v55_v24  ;;  %1574 = vmatprep.mubr.msk.f32.mxu1 %vm257_vm1, %v38_v25 }
  0x25   :  { %1549 = vmatprep.mubr.msk.f32.mxu0 %vm63_vm0, %v56_v26  ;;  %1592 = vmatpush3.msra.mxu0 %v600_v39 }
  0x26   :  { %1593 = vmatprep.subr.mxu0 %v599_v40 }
  0x27   :  { %1575 = vmatmul.mubr.msk.f32.gmra.mxu1 %vm257_vm1, %v39_v27  ;;  %1594 = vmatpush3.msra.mxu0 %v599_v40 }
  0x28   :  { %1550 = vmatmul.mubr.msk.f32.gmra.mxu0 %vm63_vm0, %v57_v28  ;;  %1577 = vmatprep.mubr.msk.f32.mxu1 %vm257_vm1, %v40_v29 }
  0x29   :  { %1552 = vmatprep.mubr.msk.f32.mxu0 %vm63_vm0, %v58_v30  ;;  %1595 = vmatprep.subr.mxu0 %v598_v41 }
  0x2a   :  { %1596 = vmatpush3.msra.mxu0 %v598_v41 }
  0x2b   :  { %1578 = vmatmul.mubr.msk.f32.gmra.mxu1 %vm257_vm1, %v41_v31  ;;  %1597 = vmatprep.subr.mxu0 %v597_v42 }
  0x2c   :  { %1553 = vmatmul.mubr.msk.f32.gmra.mxu0 %vm63_vm0, %v59_v32  ;;  %1580 = vmatprep.mubr.msk.f32.mxu1 %vm257_vm1, %v42_v33 }
  0x2d   :  { %1598 = vmatpush3.msra.mxu0 %v597_v42 }
  0x2e   :  { %1599 = vmatprep.subr.mxu0 %v596_v43 }
  0x2f   :  { %1581 = vmatmul.mubr.msk.f32.gmra.mxu1 %vm257_vm1, %v43_v34  ;;  %1600 = vmatpush3.msra.mxu0 %v596_v43 }
  0x30   :  { %1601 = vmatprep.subr.mxu0 %v595_v44 }
  0x31   :  { %1602 = vmatpush3.msra.mxu0 %v595_v44 }
  0x32   :  { %1603 = vmatprep.subr.mxu0 %v594_v45 }
  0x33   :  { %1604 = vmatpush3.msra.mxu0 %v594_v45 }
  0x34   :  { %1605 = vmatprep.subr.mxu0 %v593_v46 }
  0x35   :  { %1606 = vmatpush3.msra.mxu0 %v593_v46 }
  0x36   :  { %1607 = vmatprep.subr.mxu0 %v592_v47 }
  0x37   :  { %1608 = vmatpush3.msra.mxu0 %v592_v47 }
  0x38   :  { %1609 = vmatprep.subr.mxu0 %v591_v48 }
  0x39   :  { %1610 = vmatpush3.msra.mxu0 %v591_v48 }
  0x3a   :  { %1611 = vmatprep.subr.mxu0 %v590_v49 }
  0x3b   :  { %1612 = vmatpush3.msra.mxu0 %v590_v49 }
  0x3c   :  { %1613 = vmatprep.subr.mxu0 %v589_v51 }
  0x3d   :  { %1614 = vmatpush3.msra.mxu0 %v589_v51 }
  0xd0   :  { %v1533_v50 = vpop.f32.mrf.mxu0 }
  0xd2   :  { %v178_v52 = vpop.f32.mrf.mxu0 }
  0xd3   :  { %v1561_v53 = vpop.f32.mrf.mxu1 }
  0xd4   :  { %v1536_v54 = vpop.f32.mrf.mxu0  ;;  %v1946_v59 = vadd.f32 %v1561_v53, %v1533_v50 }
  0xd5   :  { %v372_v55 = vpop.f32.mrf.mxu1 }
  0xd6   :  { %v1944_v56 = vadd.f32 %v372_v55, %v178_v52  ;;  %v188_v57 = vpop.f32.mrf.mxu0 }
  0xd7   :  { %v1564_v58 = vpop.f32.mrf.mxu1 }
  0xd8   :  { %v1539_v60 = vpop.f32.mrf.mxu0  ;;  %v451_v62 = vadd.f32 %v1946_v59, %v1944_v56  ;;  %v388_v2 = vadd.f32 %v1564_v58, %v1536_v54 }
  0xd9   :  { %v382_v61 = vpop.f32.mrf.mxu1 }
  0xda   :  { %v383_v63 = vadd.f32 %v382_v61, %v188_v57  ;;  %v198_v0 = vpop.f32.mrf.mxu0 }
  0xdb   :  { %v1567_v1 = vpop.f32.mrf.mxu1 }
  0xdc   :  { %v452_v3 = vadd.f32 %v451_v62, %v383_v63  ;;  %v1542_v4 = vpop.f32.mrf.mxu0  ;;  %v398_v10 = vadd.f32 %v1567_v1, %v1539_v60 }
  0xdd   :  { %v392_v5 = vpop.f32.mrf.mxu1 }
  0xde   :  { %v393_v6 = vadd.f32 %v392_v5, %v198_v0  ;;  %v453_v7 = vadd.f32 %v452_v3, %v388_v2  ;;  %v208_v8 = vpop.f32.mrf.mxu0 }
  0xdf   :  { %v1570_v9 = vpop.f32.mrf.mxu1 }
  0xe0   :  { %v454_v11 = vadd.f32 %v453_v7, %v393_v6  ;;  %v1545_v12 = vpop.f32.mrf.mxu0  ;;  %v408_v18 = vadd.f32 %v1570_v9, %v1542_v4 }
  0xe1   :  { %v402_v13 = vpop.f32.mrf.mxu1 }
  0xe2   :  { %v403_v14 = vadd.f32 %v402_v13, %v208_v8  ;;  %v455_v15 = vadd.f32 %v454_v11, %v398_v10  ;;  %v218_v16 = vpop.f32.mrf.mxu0 }
  0xe3   :  { %v1573_v17 = vpop.f32.mrf.mxu1 }
  0xe4   :  { %v456_v19 = vadd.f32 %v455_v15, %v403_v14  ;;  %v1548_v20 = vpop.f32.mrf.mxu0  ;;  %v418_v26 = vadd.f32 %v1573_v17, %v1545_v12 }
  0xe5   :  { %v412_v21 = vpop.f32.mrf.mxu1 }
  0xe6   :  { %v413_v22 = vadd.f32 %v412_v21, %v218_v16  ;;  %v457_v23 = vadd.f32 %v456_v19, %v408_v18  ;;  %v228_v24 = vpop.f32.mrf.mxu0 }
  0xe7   :  { %v1576_v25 = vpop.f32.mrf.mxu1 }
  0xe8   :  { %v458_v27 = vadd.f32 %v457_v23, %v413_v22  ;;  %v1551_v28 = vpop.f32.mrf.mxu0  ;;  %v428_v34 = vadd.f32 %v1576_v25, %v1548_v20 }
  0xe9   :  { %v422_v29 = vpop.f32.mrf.mxu1 }
  0xea   :  { %v423_v30 = vadd.f32 %v422_v29, %v228_v24  ;;  %v459_v31 = vadd.f32 %v458_v27, %v418_v26  ;;  %v238_v32 = vpop.f32.mrf.mxu0 }
  0xeb   :  { %v1579_v33 = vpop.f32.mrf.mxu1 }
  0xec   :  { %v460_v35 = vadd.f32 %v459_v31, %v423_v30  ;;  %v1554_v36 = vpop.f32.mrf.mxu0  ;;  %v438_v41 = vadd.f32 %v1579_v33, %v1551_v28 }
  0xed   :  { %v432_v37 = vpop.f32.mrf.mxu1 }
  0xee   :  { %v433_v38 = vadd.f32 %v432_v37, %v238_v32  ;;  %v461_v39 = vadd.f32 %v460_v35, %v428_v34  ;;  %v248_v43 = vpop.f32.mrf.mxu0 }
  0xef   :  { %v1582_v40 = vpop.f32.mrf.mxu1 }
  0xf0   :  { %v462_v42 = vadd.f32 %v461_v39, %v433_v38  ;;  %v448_v47 = vadd.f32 %v1582_v40, %v1554_v36 }
  0xf1   :  { %v442_v44 = vpop.f32.mrf.mxu1 }
  0xf2   :  { %v443_v45 = vadd.f32 %v442_v44, %v248_v43  ;;  %v463_v46 = vadd.f32 %v462_v42, %v438_v41 }
  0xf4   :  { %v464_v48 = vadd.f32 %v463_v46, %v443_v45 }
  0xf6   :  { %v465_v49 = vadd.f32 %v464_v48, %v448_v47  ;;  %v532_v48 = vlaneseq }
  0xf8   :  { %v466_v50 = vrot.slane %v465_v49, 4 }
  0xfa   :  { %v467_v51 = vadd.f32 %v466_v50, %v465_v49  ;;  %v533_v49 = vshrl.u32 %v532_v48, 7  ;;  %v528_v50 = vld [vmem:[#allocation2 + $0x18] sm:$0x1]  ;;  %v894_v48 = vld [vmem:[#allocation2 + $0xf0] sm:$0xff] }
  0xfc   :  { %v468_v52 = vrot.slane %v467_v51, 2 }
  0xfe   :  { %v469_v53 = vadd.f32 %v468_v52, %v467_v51  ;;  %v2012_v51 = vsub.s32 0, %v533_v49  ;;  %v893_v49 = vld [vmem:[#allocation2 + $0xe8] sm:$0xff] }
 0x100   :  { %v470_v54 = vrot.slane %v469_v53, 1 }
 0x102   :  { %v471_v55 = vadd.f32 %v470_v54, %v469_v53 }
 0x104   :  { %v473_v57 = vmul.f32 0.0078125, %v471_v55  ;;  %v1409_v55 = vld [vmem:[#allocation2 + $0x20] ss:$0 sm:$0xff] }
 0x106   :  { %v1951_v58 = vsub.f32 %v1944_v56, %v473_v57  ;;  %v1954_v60 = vsub.f32 %v1946_v59, %v473_v57  ;;  %v1956_v61 = vsub.f32 %v383_v63, %v473_v57  ;;  %v477_v1 = vsub.f32 %v388_v2, %v473_v57 }
 0x107   :  { %v1962_v3 = vsub.f32 %v393_v6, %v473_v57  ;;  %v1966_v56 = vsub.f32 %v398_v10, %v473_v57  ;;  %v1968_v8 = vsub.f32 %v403_v14, %v473_v57  ;;  %v1972_v11 = vsub.f32 %v408_v18, %v473_v57 }
 0x108   :  { %v490_v62 = vmul.f32 %v1951_v58, %v1951_v58  ;;  %v491_v0 = vmul.f32 %v1954_v60, %v1954_v60  ;;  %v492_v4 = vmul.f32 %v1956_v61, %v1956_v61  ;;  %v493_v7 = vmul.f32 %v477_v1, %v477_v1 }
 0x109   :  { %v494_v63 = vmul.f32 %v1962_v3, %v1962_v3  ;;  %v495_v2 = vmul.f32 %v1966_v56, %v1966_v56  ;;  %v1976_v12 = vsub.f32 %v413_v22, %v473_v57  ;;  %v496_v10 = vmul.f32 %v1968_v8, %v1968_v8 }
 0x10a   :  { %v506_v5 = vadd.f32 %v491_v0, %v490_v62  ;;  %v1980_v15 = vsub.f32 %v418_v26, %v473_v57  ;;  %v497_v14 = vmul.f32 %v1972_v11, %v1972_v11  ;;  %v1984_v17 = vsub.f32 %v423_v30, %v473_v57 }
 0x10b   :  { %v498_v18 = vmul.f32 %v1976_v12, %v1976_v12  ;;  %v1988_v20 = vsub.f32 %v428_v34, %v473_v57  ;;  %v1992_v23 = vsub.f32 %v433_v38, %v473_v57  ;;  %v1996_v26 = vsub.f32 %v438_v41, %v473_v57 }
 0x10c   :  { %v507_v59 = vadd.f32 %v506_v5, %v492_v4  ;;  %v499_v21 = vmul.f32 %v1980_v15, %v1980_v15  ;;  %v500_v24 = vmul.f32 %v1984_v17, %v1984_v17  ;;  %v2000_v29 = vsub.f32 %v443_v45, %v473_v57 }
 0x10d   :  { %v501_v27 = vmul.f32 %v1988_v20, %v1988_v20  ;;  %v502_v30 = vmul.f32 %v1992_v23, %v1992_v23  ;;  %v2004_v32 = vsub.f32 %v448_v47, %v473_v57  ;;  %v503_v33 = vmul.f32 %v1996_v26, %v1996_v26 }
 0x10e   :  { %v508_v9 = vadd.f32 %v507_v59, %v493_v7  ;;  %v504_v35 = vmul.f32 %v2000_v29, %v2000_v29 }
 0x10f   :  { %v505_v37 = vmul.f32 %v2004_v32, %v2004_v32 }
 0x110   :  { %v509_v6 = vadd.f32 %v508_v9, %v494_v63 }
 0x112   :  { %v510_v13 = vadd.f32 %v509_v6, %v495_v2 }
 0x114   :  { %v511_v16 = vadd.f32 %v510_v13, %v496_v10 }
 0x116   :  { %v512_v19 = vadd.f32 %v511_v16, %v497_v14 }
 0x118   :  { %v513_v22 = vadd.f32 %v512_v19, %v498_v18 }
 0x11a   :  { %v514_v25 = vadd.f32 %v513_v22, %v499_v21 }
 0x11c   :  { %v515_v28 = vadd.f32 %v514_v25, %v500_v24 }
 0x11e   :  { %v516_v31 = vadd.f32 %v515_v28, %v501_v27 }
 0x120   :  { %v517_v34 = vadd.f32 %v516_v31, %v502_v30 }
 0x122   :  { %v518_v36 = vadd.f32 %v517_v34, %v503_v33 }
 0x124   :  { %v519_v38 = vadd.f32 %v518_v36, %v504_v35 }
 0x126   :  { %v520_v39 = vadd.f32 %v519_v38, %v505_v37 }
 0x128   :  { %v521_v40 = vrot.slane %v520_v39, 4 }
 0x12a   :  { %v522_v41 = vadd.f32 %v521_v40, %v520_v39 }
 0x12c   :  { %v523_v42 = vrot.slane %v522_v41, 2 }
 0x12e   :  { %v524_v43 = vadd.f32 %v523_v42, %v522_v41  ;;  %v901_v42 = vld [vmem:[#allocation2 + $0x128] sm:$0xff] }
 0x130   :  { %v525_v44 = vrot.slane %v524_v43, 1 }
 0x132   :  { %v526_v45 = vadd.f32 %v525_v44, %v524_v43  ;;  %v900_v43 = vld [vmem:[#allocation2 + $0x120] sm:$0xff]  ;;  %v898_v44 = vld [vmem:[#allocation2 + $0x110] sm:$0xff] }
 0x134   :  { %v527_v46 = vmul.f32 0.0078125, %v526_v45  ;;  %v897_v45 = vld [vmem:[#allocation2 + $0x108] sm:$0xff] }
 0x136   :  { %v529_v47 = vadd.f32 1e-05, %v527_v46  ;;  %v896_v46 = vld [vmem:[#allocation2 + $0x100] sm:$0xff] }
 0x138   :  { %1698 = vrsqrt.f32 %v529_v47  ;;  %v895_v47 = vld [vmem:[#allocation2 + $0xf8] sm:$0xff] }
 0x145   :  { %v1699_v52 = vpop.eup %1698 }
 0x146   :  { %v531_v53 = vmul.f32 %v1699_v52, %v528_v50  ;;  %v892_v50 = vld [vmem:[#allocation2 + $0xe0] sm:$0xff]  ;;  %v891_v52 = vld [vmem:[#allocation2 + $0xd8] sm:$0xff] }
 0x148   :  { %v535_v54 = vrot.slane %v531_v53, %v2012_v51  ;;  %v890_v53 = vld [vmem:[#allocation2 + $0xd0] sm:$0xff] }
 0x14a   :  { %v536_v57 = vmul.f32 %v535_v54, %v1951_v58  ;;  %v537_v62 = vmul.f32 %v535_v54, %v1954_v60  ;;  %v538_v0 = vmul.f32 %v535_v54, %v1956_v61  ;;  %v539_v4 = vmul.f32 %v535_v54, %v477_v1 }
 0x14b   :  { %v540_v63 = vmul.f32 %v535_v54, %v1962_v3  ;;  %v541_v10 = vmul.f32 %v535_v54, %v1966_v56  ;;  %v542_v58 = vmul.f32 %v535_v54, %v1968_v8  ;;  %v543_v1 = vmul.f32 %v535_v54, %v1972_v11 }
 0x14c   :  { %v557_v5 = vadd.f32 %v1409_v55, %v536_v57  ;;  %v558_v7 = vadd.f32 %v1409_v55, %v537_v62  ;;  %v559_v59 = vadd.f32 %v1409_v55, %v538_v0  ;;  %v560_v6 = vadd.f32 %v1409_v55, %v539_v4  ;;  %v887_v57 = vld [vmem:[#allocation2 + $0xb8] sm:$0xff] }
 0x14d   :  { %v561_v14 = vadd.f32 %v1409_v55, %v540_v63  ;;  %v562_v61 = vadd.f32 %v1409_v55, %v541_v10  ;;  %v563_v18 = vadd.f32 %v1409_v55, %v542_v58  ;;  %v544_v3 = vmul.f32 %v535_v54, %v1976_v12 }
 0x14e   :  { %v573_v9 = vmax.f32 %v557_v5, 0.0  ;;  %v574_v2 = vmax.f32 %v558_v7, 0.0  ;;  %v575_v13 = vmax.f32 %v559_v59, 0.0  ;;  %v576_v60 = vmax.f32 %v560_v6, 0.0 }
 0x14f   :  { %v577_v16 = vmax.f32 %v561_v14, 0.0  ;;  %v578_v19 = vmax.f32 %v562_v61, 0.0  ;;  %v564_v21 = vadd.f32 %v1409_v55, %v543_v1  ;;  %v545_v56 = vmul.f32 %v535_v54, %v1980_v15 }
 0x150   :  { %1615 = vmatprep.mubr.f32.mxu0 %v573_v9  ;;  %v579_v22 = vmax.f32 %v563_v18, 0.0  ;;  %v565_v24 = vadd.f32 %v1409_v55, %v544_v3  ;;  %v546_v8 = vmul.f32 %v535_v54, %v1984_v17  ;;  %v547_v11 = vmul.f32 %v535_v54, %v1988_v20 }
 0x151   :  { %1616 = vmatmul.mubr.f32.vlgmr.msra.gmra.mxu0 %v574_v2  ;;  %v580_v25 = vmax.f32 %v564_v21, 0.0  ;;  %v566_v27 = vadd.f32 %v1409_v55, %v545_v56  ;;  %v548_v12 = vmul.f32 %v535_v54, %v1992_v23  ;;  %v549_v15 = vmul.f32 %v535_v54, %v1996_v26 }
 0x152   :  { %1618 = vmatprep.mubr.f32.mxu0 %v575_v13  ;;  %v581_v28 = vmax.f32 %v565_v24, 0.0  ;;  %v567_v30 = vadd.f32 %v1409_v55, %v546_v8  ;;  %v568_v33 = vadd.f32 %v1409_v55, %v547_v11  ;;  %v550_v34 = vmul.f32 %v535_v54, %v2000_v29  ;;  %v902_v29 = vld [vmem:[#allocation2 + $0x130] sm:$0xff] }
 0x153   :  { %v582_v31 = vmax.f32 %v566_v27, 0.0  ;;  %v569_v17 = vadd.f32 %v1409_v55, %v548_v12  ;;  %v570_v37 = vadd.f32 %v1409_v55, %v549_v15  ;;  %v551_v20 = vmul.f32 %v535_v54, %v2004_v32  ;;  %1639 = vmatprep.subr.mxu1 %v902_v29  ;;  %v899_v32 = vld [vmem:[#allocation2 + $0x118] sm:$0xff]  ;;  %v889_v54 = vld [vmem:[#allocation2 + $0xc8] sm:$0xff] }
 0x154   :  { %v583_v35 = vmax.f32 %v567_v30, 0.0  ;;  %v584_v36 = vmax.f32 %v568_v33, 0.0  ;;  %v571_v39 = vadd.f32 %v1409_v55, %v550_v34  ;;  %1640 = vmatpush3.msra.mxu1 %v902_v29 }
 0x155   :  { %1619 = vmatmul.mubr.f32.gmra.mxu0 %v576_v60  ;;  %v585_v38 = vmax.f32 %v569_v17, 0.0  ;;  %v586_v23 = vmax.f32 %v570_v37, 0.0  ;;  %v572_v40 = vadd.f32 %v1409_v55, %v551_v20  ;;  %1641 = vmatprep.subr.mxu1 %v901_v42  ;;  %v888_v55 = vld [vmem:[#allocation2 + $0xc0] sm:$0xff] }
 0x156   :  { %1621 = vmatprep.mubr.f32.mxu0 %v577_v16  ;;  %v587_v41 = vmax.f32 %v571_v39, 0.0  ;;  %1642 = vmatpush3.msra.mxu1 %v901_v42 }
 0x157   :  { %v588_v26 = vmax.f32 %v572_v40, 0.0  ;;  %1643 = vmatprep.subr.mxu1 %v900_v43 }
 0x158   :  { %1644 = vmatpush3.msra.mxu1 %v900_v43 }
 0x159   :  { %1622 = vmatmul.mubr.f32.gmra.mxu0 %v578_v19  ;;  %1645 = vmatprep.subr.mxu1 %v899_v32 }
 0x15a   :  { %1624 = vmatprep.mubr.f32.mxu0 %v579_v22  ;;  %1646 = vmatpush3.msra.mxu1 %v899_v32 }
 0x15b   :  { %1647 = vmatprep.subr.mxu1 %v898_v44 }
 0x15c   :  { %1648 = vmatpush3.msra.mxu1 %v898_v44 }
 0x15d   :  { %1625 = vmatmul.mubr.f32.gmra.mxu0 %v580_v25  ;;  %1649 = vmatprep.subr.mxu1 %v897_v45 }
 0x15e   :  { %1627 = vmatprep.mubr.f32.mxu0 %v581_v28  ;;  %1650 = vmatpush3.msra.mxu1 %v897_v45 }
 0x15f   :  { %1651 = vmatprep.subr.mxu1 %v896_v46 }
 0x160   :  { %1652 = vmatpush3.msra.mxu1 %v896_v46 }
 0x161   :  { %1628 = vmatmul.mubr.f32.gmra.mxu0 %v582_v31  ;;  %1653 = vmatprep.subr.mxu1 %v895_v47 }
 0x162   :  { %1630 = vmatprep.mubr.f32.mxu0 %v583_v35  ;;  %1654 = vmatpush3.msra.mxu1 %v895_v47 }
 0x163   :  { %1655 = vmatprep.subr.mxu1 %v894_v48 }
 0x164   :  { %1656 = vmatpush3.msra.mxu1 %v894_v48 }
 0x165   :  { %1631 = vmatmul.mubr.f32.gmra.mxu0 %v584_v36  ;;  %1657 = vmatprep.subr.mxu1 %v893_v49 }
 0x166   :  { %1633 = vmatprep.mubr.f32.mxu0 %v585_v38  ;;  %1658 = vmatpush3.msra.mxu1 %v893_v49 }
 0x167   :  { %1659 = vmatprep.subr.mxu1 %v892_v50 }
 0x168   :  { %1660 = vmatpush3.msra.mxu1 %v892_v50 }
 0x169   :  { %1634 = vmatmul.mubr.f32.gmra.mxu0 %v586_v23  ;;  %1661 = vmatprep.subr.mxu1 %v891_v52 }
 0x16a   :  { %1636 = vmatprep.mubr.f32.mxu0 %v587_v41  ;;  %1662 = vmatpush3.msra.mxu1 %v891_v52 }
 0x16b   :  { %1663 = vmatprep.subr.mxu1 %v890_v53 }
 0x16c   :  { %1664 = vmatpush3.msra.mxu1 %v890_v53 }
 0x16d   :  { %1637 = vmatmul.mubr.f32.gmra.mxu0 %v588_v26  ;;  %1665 = vmatprep.subr.mxu1 %v889_v54 }
 0x16e   :  { %1666 = vmatpush3.msra.mxu1 %v889_v54 }
 0x16f   :  { %1667 = vmatprep.subr.mxu1 %v888_v55 }
 0x170   :  { %1668 = vmatpush3.msra.mxu1 %v888_v55 }
 0x171   :  { %1669 = vmatprep.subr.mxu1 %v887_v57 }
 0x172   :  { %1670 = vmatpush3.msra.mxu1 %v887_v57 }
 0x211   :  { %v1617_v62 = vpop.f32.mrf.mxu0 }
 0x213   :  { %v671_v0 = vpop.f32.mrf.mxu0 }
 0x214   :  { %v750_v5 = vadd.f32 %v1617_v62, %v671_v0 }
 0x215   :  { %v1620_v4 = vpop.f32.mrf.mxu0 }
 0x217   :  { %v681_v7 = vpop.f32.mrf.mxu0 }
 0x218   :  { %v751_v59 = vadd.f32 %v750_v5, %v681_v7 }
 0x219   :  { %v1623_v63 = vpop.f32.mrf.mxu0 }
 0x21a   :  { %v752_v9 = vadd.f32 %v1620_v4, %v751_v59 }
 0x21b   :  { %v691_v2 = vpop.f32.mrf.mxu0 }
 0x21c   :  { %v753_v6 = vadd.f32 %v752_v9, %v691_v2 }
 0x21d   :  { %v1626_v10 = vpop.f32.mrf.mxu0 }
 0x21e   :  { %v754_v13 = vadd.f32 %v1623_v63, %v753_v6 }
 0x21f   :  { %v701_v14 = vpop.f32.mrf.mxu0 }
 0x220   :  { %v755_v58 = vadd.f32 %v754_v13, %v701_v14 }
 0x221   :  { %v1629_v60 = vpop.f32.mrf.mxu0 }
 0x222   :  { %v756_v61 = vadd.f32 %v1626_v10, %v755_v58 }
 0x223   :  { %v711_v1 = vpop.f32.mrf.mxu0 }
 0x224   :  { %v757_v16 = vadd.f32 %v756_v61, %v711_v1 }
 0x225   :  { %v1632_v18 = vpop.f32.mrf.mxu0 }
 0x226   :  { %v758_v3 = vadd.f32 %v1629_v60, %v757_v16 }
 0x227   :  { %v721_v19 = vpop.f32.mrf.mxu0 }
 0x228   :  { %v759_v21 = vadd.f32 %v758_v3, %v721_v19 }
 0x229   :  { %v1635_v56 = vpop.f32.mrf.mxu0 }
 0x22a   :  { %v760_v22 = vadd.f32 %v1632_v18, %v759_v21 }
 0x22b   :  { %v731_v24 = vpop.f32.mrf.mxu0 }
 0x22c   :  { %v761_v8 = vadd.f32 %v760_v22, %v731_v24 }
 0x22d   :  { %v1638_v25 = vpop.f32.mrf.mxu0 }
 0x22e   :  { %v762_v27 = vadd.f32 %v1635_v56, %v761_v8 }
 0x22f   :  { %v741_v11 = vpop.f32.mrf.mxu0 }
 0x230   :  { %v763_v28 = vadd.f32 %v762_v27, %v741_v11 }
 0x232   :  { %v764_v30 = vadd.f32 %v1638_v25, %v763_v28 }
 0x234   :  { %v765_v12 = vrot.slane %v764_v30, 4 }
 0x236   :  { %v766_v31 = vadd.f32 %v765_v12, %v764_v30  ;;  %v826_v30 = vld [vmem:[#allocation2 + $0xa8] sm:$0x1] }
 0x238   :  { %v767_v33 = vrot.slane %v766_v31, 2 }
 0x23a   :  { %v768_v15 = vadd.f32 %v767_v33, %v766_v31 }
 0x23c   :  { %v769_v34 = vrot.slane %v768_v15, 1 }
 0x23e   :  { %v770_v35 = vadd.f32 %v769_v34, %v768_v15  ;;  %v1410_v15 = vld [vmem:[#allocation2 + $0xb0] ss:$0 sm:$0xff] }
 0x240   :  { %v771_v17 = vmul.f32 0.0078125, %v770_v35 }
 0x242   :  { %v772_v36 = vsub.f32 %v671_v0, %v771_v17  ;;  %v773_v37 = vsub.f32 %v1617_v62, %v771_v17  ;;  %v774_v20 = vsub.f32 %v681_v7, %v771_v17  ;;  %v775_v23 = vsub.f32 %v1620_v4, %v771_v17 }
 0x243   :  { %v776_v40 = vsub.f32 %v691_v2, %v771_v17  ;;  %v2030_v29 = vsub.f32 %v1623_v63, %v771_v17  ;;  %v2032_v32 = vsub.f32 %v701_v14, %v771_v17  ;;  %v2034_v46 = vsub.f32 %v1626_v10, %v771_v17 }
 0x244   :  { %v788_v38 = vmul.f32 %v772_v36, %v772_v36  ;;  %v789_v39 = vmul.f32 %v773_v37, %v773_v37  ;;  %v790_v41 = vmul.f32 %v774_v20, %v774_v20  ;;  %v791_v42 = vmul.f32 %v775_v23, %v775_v23 }
 0x245   :  { %v792_v44 = vmul.f32 %v776_v40, %v776_v40  ;;  %v793_v47 = vmul.f32 %v2030_v29, %v2030_v29  ;;  %v2038_v49 = vsub.f32 %v711_v1, %v771_v17  ;;  %v794_v50 = vmul.f32 %v2032_v32, %v2032_v32 }
 0x246   :  { %v804_v26 = vadd.f32 %v789_v39, %v788_v38  ;;  %v2042_v53 = vsub.f32 %v1629_v60, %v771_v17  ;;  %v795_v54 = vmul.f32 %v2034_v46, %v2034_v46  ;;  %v2046_v57 = vsub.f32 %v721_v19, %v771_v17 }
 0x247   :  { %v796_v62 = vmul.f32 %v2038_v49, %v2038_v49  ;;  %v2050_v4 = vsub.f32 %v1632_v18, %v771_v17  ;;  %v2054_v59 = vsub.f32 %v731_v24, %v771_v17  ;;  %v2058_v2 = vsub.f32 %v1635_v56, %v771_v17 }
 0x248   :  { %v805_v43 = vadd.f32 %v804_v26, %v790_v41  ;;  %v797_v5 = vmul.f32 %v2042_v53, %v2042_v53  ;;  %v798_v63 = vmul.f32 %v2046_v57, %v2046_v57  ;;  %v2062_v13 = vsub.f32 %v741_v11, %v771_v17 }
 0x249   :  { %v799_v6 = vmul.f32 %v2050_v4, %v2050_v4  ;;  %v800_v14 = vmul.f32 %v2054_v59, %v2054_v59  ;;  %v2066_v60 = vsub.f32 %v1638_v25, %v771_v17  ;;  %v801_v61 = vmul.f32 %v2058_v2, %v2058_v2 }
 0x24a   :  { %v806_v45 = vadd.f32 %v805_v43, %v791_v42  ;;  %v802_v16 = vmul.f32 %v2062_v13, %v2062_v13 }
 0x24b   :  { %v803_v3 = vmul.f32 %v2066_v60, %v2066_v60 }
 0x24c   :  { %v807_v48 = vadd.f32 %v806_v45, %v792_v44 }
 0x24e   :  { %v808_v52 = vadd.f32 %v807_v48, %v793_v47 }
 0x250   :  { %v809_v55 = vadd.f32 %v808_v52, %v794_v50 }
 0x252   :  { %v810_v0 = vadd.f32 %v809_v55, %v795_v54 }
 0x254   :  { %v811_v7 = vadd.f32 %v810_v0, %v796_v62 }
 0x256   :  { %v812_v9 = vadd.f32 %v811_v7, %v797_v5 }
 0x258   :  { %v813_v10 = vadd.f32 %v812_v9, %v798_v63 }
 0x25a   :  { %v814_v58 = vadd.f32 %v813_v10, %v799_v6 }
 0x25c   :  { %v815_v1 = vadd.f32 %v814_v58, %v800_v14 }
 0x25e   :  { %v816_v18 = vadd.f32 %v815_v1, %v801_v61 }
 0x260   :  { %v817_v19 = vadd.f32 %v816_v18, %v802_v16 }
 0x262   :  { %v818_v21 = vadd.f32 %v817_v19, %v803_v3 }
 0x264   :  { %v819_v56 = vrot.slane %v818_v21, 4 }
 0x266   :  { %v820_v22 = vadd.f32 %v819_v56, %v818_v21 }
 0x268   :  { %v821_v24 = vrot.slane %v820_v22, 2 }
 0x26a   :  { %v822_v8 = vadd.f32 %v821_v24, %v820_v22 }
 0x26c   :  { %v823_v27 = vrot.slane %v822_v8, 1 }
 0x26e   :  { %v824_v25 = vadd.f32 %v823_v27, %v822_v8 }
 0x270   :  { %v825_v11 = vmul.f32 0.0078125, %v824_v25 }
 0x272   :  { %v827_v28 = vadd.f32 1e-05, %v825_v11 }
 0x274   :  { %1700 = vrsqrt.f32 %v827_v28 }
 0x281   :  { %v1701_v12 = vpop.eup %1700 }
 0x282   :  { %v829_v31 = vmul.f32 %v1701_v12, %v826_v30 }
 0x284   :  { %v833_v33 = vrot.slane %v829_v31, %v2012_v51 }
 0x286   :  { %v834_v34 = vmul.f32 %v833_v33, %v772_v36  ;;  %v835_v35 = vmul.f32 %v833_v33, %v773_v37  ;;  %v836_v17 = vmul.f32 %v833_v33, %v774_v20  ;;  %v837_v38 = vmul.f32 %v833_v33, %v775_v23 }
 0x287   :  { %v838_v42 = vmul.f32 %v833_v33, %v776_v40  ;;  %v839_v47 = vmul.f32 %v833_v33, %v2030_v29  ;;  %v840_v52 = vmul.f32 %v833_v33, %v2032_v32  ;;  %v841_v20 = vmul.f32 %v833_v33, %v2034_v46 }
 0x288   :  { %v855_v39 = vadd.f32 %v1410_v15, %v834_v34  ;;  %v856_v41 = vadd.f32 %v1410_v15, %v835_v35  ;;  %v857_v26 = vadd.f32 %v1410_v15, %v836_v17  ;;  %v858_v45 = vadd.f32 %v1410_v15, %v837_v38 }
 0x289   :  { %v859_v50 = vadd.f32 %v1410_v15, %v838_v42  ;;  %v860_v37 = vadd.f32 %v1410_v15, %v839_v47  ;;  %v861_v54 = vadd.f32 %v1410_v15, %v840_v52  ;;  %v842_v40 = vmul.f32 %v833_v33, %v2038_v49 }
 0x28a   :  { %v871_v43 = vmax.f32 %v855_v39, 0.0  ;;  %v872_v44 = vmax.f32 %v856_v41, 0.0  ;;  %v873_v48 = vmax.f32 %v857_v26, 0.0  ;;  %v874_v36 = vmax.f32 %v858_v45, 0.0 }
 0x28b   :  { %v875_v23 = vmax.f32 %v859_v50, 0.0  ;;  %v876_v55 = vmax.f32 %v860_v37, 0.0  ;;  %v862_v62 = vadd.f32 %v1410_v15, %v841_v20  ;;  %v843_v29 = vmul.f32 %v833_v33, %v2042_v53 }
 0x28c   :  { %1671 = vmatprep.mubr.f32.mxu1 %v871_v43  ;;  %v877_v0 = vmax.f32 %v861_v54, 0.0  ;;  %v863_v5 = vadd.f32 %v1410_v15, %v842_v40  ;;  %v844_v32 = vmul.f32 %v833_v33, %v2046_v57  ;;  %v845_v46 = vmul.f32 %v833_v33, %v2050_v4 }
 0x28d   :  { %1672 = vmatmul.mubr.f32.vlgmr.msra.gmra.mxu1 %v872_v44  ;;  %v878_v7 = vmax.f32 %v862_v62, 0.0  ;;  %v864_v63 = vadd.f32 %v1410_v15, %v843_v29  ;;  %v846_v49 = vmul.f32 %v833_v33, %v2054_v59  ;;  %v847_v53 = vmul.f32 %v833_v33, %v2058_v2 }
 0x28e   :  { %1674 = vmatprep.mubr.f32.mxu1 %v873_v48  ;;  %v879_v9 = vmax.f32 %v863_v5, 0.0  ;;  %v865_v6 = vadd.f32 %v1410_v15, %v844_v32  ;;  %v866_v14 = vadd.f32 %v1410_v15, %v845_v46  ;;  %v848_v58 = vmul.f32 %v833_v33, %v2062_v13 }
 0x28f   :  { %v880_v10 = vmax.f32 %v864_v63, 0.0  ;;  %v867_v57 = vadd.f32 %v1410_v15, %v846_v49  ;;  %v868_v16 = vadd.f32 %v1410_v15, %v847_v53  ;;  %v849_v4 = vmul.f32 %v833_v33, %v2066_v60 }
 0x290   :  { %v881_v61 = vmax.f32 %v865_v6, 0.0  ;;  %v882_v1 = vmax.f32 %v866_v14, 0.0  ;;  %v869_v3 = vadd.f32 %v1410_v15, %v848_v58 }
 0x291   :  { %1675 = vmatmul.mubr.f32.gmra.mxu1 %v874_v36  ;;  %v883_v18 = vmax.f32 %v867_v57, 0.0  ;;  %v884_v59 = vmax.f32 %v868_v16, 0.0  ;;  %v870_v19 = vadd.f32 %v1410_v15, %v849_v4 }
 0x292   :  { %1677 = vmatprep.mubr.f32.mxu1 %v875_v23  ;;  %v885_v21 = vmax.f32 %v869_v3, 0.0 }
 0x293   :  { %v886_v2 = vmax.f32 %v870_v19, 0.0 }
 0x295   :  { %1678 = vmatmul.mubr.f32.gmra.mxu1 %v876_v55 }
 0x296   :  { %1680 = vmatprep.mubr.f32.mxu1 %v877_v0 }
 0x299   :  { %1681 = vmatmul.mubr.f32.gmra.mxu1 %v878_v7 }
 0x29a   :  { %1683 = vmatprep.mubr.f32.mxu1 %v879_v9 }
 0x29d   :  { %1684 = vmatmul.mubr.f32.gmra.mxu1 %v880_v10 }
 0x29e   :  { %1686 = vmatprep.mubr.f32.mxu1 %v881_v61 }
 0x2a1   :  { %1687 = vmatmul.mubr.f32.gmra.mxu1 %v882_v1 }
 0x2a2   :  { %1689 = vmatprep.mubr.f32.mxu1 %v883_v18 }
 0x2a5   :  { %1690 = vmatmul.mubr.f32.gmra.mxu1 %v884_v59 }
 0x2a6   :  { %1692 = vmatprep.mubr.f32.mxu1 %v885_v21 }
 0x2a9   :  { %1693 = vmatmul.mubr.f32.gmra.mxu1 %v886_v2 }
 0x34d   :  { %v1673_v13 = vpop.f32.mrf.mxu1 }
 0x34f   :  { %v969_v56 = vpop.f32.mrf.mxu1 }
 0x350   :  { %v1048_v24 = vadd.f32 %v1673_v13, %v969_v56 }
 0x351   :  { %v1676_v22 = vpop.f32.mrf.mxu1 }
 0x353   :  { %v979_v8 = vpop.f32.mrf.mxu1 }
 0x354   :  { %v1049_v27 = vadd.f32 %v1048_v24, %v979_v8 }
 0x355   :  { %v1679_v25 = vpop.f32.mrf.mxu1 }
 0x356   :  { %v1050_v11 = vadd.f32 %v1676_v22, %v1049_v27 }
 0x357   :  { %v989_v60 = vpop.f32.mrf.mxu1 }
 0x358   :  { %v1051_v28 = vadd.f32 %v1050_v11, %v989_v60 }
 0x359   :  { %v1682_v30 = vpop.f32.mrf.mxu1 }
 0x35a   :  { %v1052_v12 = vadd.f32 %v1679_v25, %v1051_v28 }
 0x35b   :  { %v999_v31 = vpop.f32.mrf.mxu1 }
 0x35c   :  { %v1053_v33 = vadd.f32 %v1052_v12, %v999_v31 }
 0x35d   :  { %v1685_v15 = vpop.f32.mrf.mxu1 }
 0x35e   :  { %v1054_v34 = vadd.f32 %v1682_v30, %v1053_v33 }
 0x35f   :  { %v1009_v35 = vpop.f32.mrf.mxu1 }
 0x360   :  { %v1055_v17 = vadd.f32 %v1054_v34, %v1009_v35 }
 0x361   :  { %v1688_v38 = vpop.f32.mrf.mxu1 }
 0x362   :  { %v1056_v39 = vadd.f32 %v1685_v15, %v1055_v17 }
 0x363   :  { %v1019_v41 = vpop.f32.mrf.mxu1 }
 0x364   :  { %v1057_v26 = vadd.f32 %v1056_v39, %v1019_v41 }
 0x365   :  { %v1691_v42 = vpop.f32.mrf.mxu1 }
 0x366   :  { %v1058_v43 = vadd.f32 %v1688_v38, %v1057_v26 }
 0x367   :  { %v1029_v44 = vpop.f32.mrf.mxu1 }
 0x368   :  { %v1059_v45 = vadd.f32 %v1058_v43, %v1029_v44 }
 0x369   :  { %v1694_v47 = vpop.f32.mrf.mxu1 }
 0x36a   :  { %v1060_v48 = vadd.f32 %v1691_v42, %v1059_v45 }
 0x36b   :  { %v1039_v50 = vpop.f32.mrf.mxu1 }
 0x36c   :  { %v1061_v52 = vadd.f32 %v1060_v48, %v1039_v50 }
 0x36e   :  { %v1062_v36 = vadd.f32 %v1694_v47, %v1061_v52 }
 0x370   :  { %v1063_v37 = vrot.slane %v1062_v36, 4 }
 0x372   :  { %v1064_v20 = vadd.f32 %v1063_v37, %v1062_v36  ;;  %v1124_v36 = vld [vmem:[#allocation2 + $0x138] sm:$0x1] }
 0x374   :  { %v1065_v23 = vrot.slane %v1064_v20, 2 }
 0x376   :  { %v1066_v54 = vadd.f32 %v1065_v23, %v1064_v20 }
 0x378   :  { %v1067_v40 = vrot.slane %v1066_v54, 1 }
 0x37a   :  { %v1068_v55 = vadd.f32 %v1067_v40, %v1066_v54  ;;  %v2127_v54 = vld [vmem:[#allocation2 + $0x140] ss:$0 sm:$0xff] }
 0x37c   :  { %v1069_v62 = vmul.f32 0.0078125, %v1068_v55 }
 0x37e   :  { %v1070_v29 = vsub.f32 %v969_v56, %v1069_v62  ;;  %v2086_v0 = vsub.f32 %v1673_v13, %v1069_v62  ;;  %v1072_v5 = vsub.f32 %v979_v8, %v1069_v62  ;;  %v1073_v63 = vsub.f32 %v1676_v22, %v1069_v62 }
 0x37f   :  { %v1074_v46 = vsub.f32 %v989_v60, %v1069_v62  ;;  %v1075_v49 = vsub.f32 %v1679_v25, %v1069_v62  ;;  %v2090_v53 = vsub.f32 %v999_v31, %v1069_v62  ;;  %v1077_v57 = vsub.f32 %v1682_v30, %v1069_v62 }
 0x380   :  { %v1086_v32 = vmul.f32 %v1070_v29, %v1070_v29  ;;  %v1087_v7 = vmul.f32 %v2086_v0, %v2086_v0  ;;  %v1088_v9 = vmul.f32 %v1072_v5, %v1072_v5  ;;  %v1089_v10 = vmul.f32 %v1073_v63, %v1073_v63 }
 0x381   :  { %v1090_v58 = vmul.f32 %v1074_v46, %v1074_v46  ;;  %v1091_v1 = vmul.f32 %v1075_v49, %v1075_v49  ;;  %v2092_v4 = vsub.f32 %v1009_v35, %v1069_v62  ;;  %v1092_v18 = vmul.f32 %v2090_v53, %v2090_v53 }
 0x382   :  { %v1102_v6 = vadd.f32 %v1087_v7, %v1086_v32  ;;  %v2096_v59 = vsub.f32 %v1685_v15, %v1069_v62  ;;  %v1093_v19 = vmul.f32 %v1077_v57, %v1077_v57  ;;  %v2098_v2 = vsub.f32 %v1019_v41, %v1069_v62 }
 0x383   :  { %v1094_v13 = vmul.f32 %v2092_v4, %v2092_v4  ;;  %v2102_v22 = vsub.f32 %v1688_v38, %v1069_v62  ;;  %v2106_v27 = vsub.f32 %v1029_v44, %v1069_v62  ;;  %v2110_v60 = vsub.f32 %v1691_v42, %v1069_v62 }
 0x384   :  { %v1103_v14 = vadd.f32 %v1102_v6, %v1088_v9  ;;  %v1095_v24 = vmul.f32 %v2096_v59, %v2096_v59  ;;  %v1096_v25 = vmul.f32 %v2098_v2, %v2098_v2  ;;  %v2114_v12 = vsub.f32 %v1039_v50, %v1069_v62 }
 0x385   :  { %v1097_v28 = vmul.f32 %v2102_v22, %v2102_v22  ;;  %v1098_v31 = vmul.f32 %v2106_v27, %v2106_v27  ;;  %v2118_v15 = vsub.f32 %v1694_v47, %v1069_v62  ;;  %v1099_v34 = vmul.f32 %v2110_v60, %v2110_v60 }
 0x386   :  { %v1104_v61 = vadd.f32 %v1103_v14, %v1089_v10  ;;  %v1100_v17 = vmul.f32 %v2114_v12, %v2114_v12 }
 0x387   :  { %v1101_v39 = vmul.f32 %v2118_v15, %v2118_v15 }
 0x388   :  { %v1105_v16 = vadd.f32 %v1104_v61, %v1090_v58  ;;  %v2133_v58 = vld [vmem:[#allocation2 + $0x148] ss:$0 sm:$0xff] }
 0x38a   :  { %v1106_v3 = vadd.f32 %v1105_v16, %v1091_v1 }
 0x38c   :  { %v1107_v21 = vadd.f32 %v1106_v3, %v1092_v18 }
 0x38e   :  { %v1108_v56 = vadd.f32 %v1107_v21, %v1093_v19 }
 0x390   :  { %v1109_v8 = vadd.f32 %v1108_v56, %v1094_v13 }
 0x392   :  { %v1110_v11 = vadd.f32 %v1109_v8, %v1095_v24 }
 0x394   :  { %v1111_v30 = vadd.f32 %v1110_v11, %v1096_v25 }
 0x396   :  { %v1112_v33 = vadd.f32 %v1111_v30, %v1097_v28 }
 0x398   :  { %v1113_v35 = vadd.f32 %v1112_v33, %v1098_v31 }
 0x39a   :  { %v1114_v38 = vadd.f32 %v1113_v35, %v1099_v34 }
 0x39c   :  { %v1115_v41 = vadd.f32 %v1114_v38, %v1100_v17 }
 0x39e   :  { %v1116_v26 = vadd.f32 %v1115_v41, %v1101_v39 }
 0x3a0   :  { %v1117_v42 = vrot.slane %v1116_v26, 4 }
 0x3a2   :  { %v1118_v43 = vadd.f32 %v1117_v42, %v1116_v26 }
 0x3a4   :  { %v1119_v44 = vrot.slane %v1118_v43, 2 }
 0x3a6   :  { %v1120_v45 = vadd.f32 %v1119_v44, %v1118_v43 }
 0x3a8   :  { %v1121_v48 = vrot.slane %v1120_v45, 1 }
 0x3aa   :  { %v1122_v47 = vadd.f32 %v1121_v48, %v1120_v45 }
 0x3ac   :  { %v1123_v50 = vmul.f32 0.0078125, %v1122_v47 }
 0x3ae   :  { %v1125_v52 = vadd.f32 1e-05, %v1123_v50 }
 0x3b0   :  { %1702 = vrsqrt.f32 %v1125_v52 }
 0x3bd   :  { %v1703_v37 = vpop.eup %1702 }
 0x3be   :  { %v1127_v20 = vmul.f32 %v1703_v37, %v1124_v36 }
 0x3c0   :  { %v1131_v23 = vrot.slane %v1127_v20, %v2012_v51 }
 0x3c2   :  { %v1134_v40 = vmul.f32 %v1131_v23, %v1072_v5  ;;  %v1132_v55 = vmul.f32 %v1131_v23, %v1070_v29  ;;  %v1135_v62 = vmul.f32 %v1131_v23, %v1073_v63  ;;  %v1133_v32 = vmul.f32 %v1131_v23, %v2086_v0 }
 0x3c3   :  { %v1137_v7 = vmul.f32 %v1131_v23, %v1075_v49  ;;  %v1136_v9 = vmul.f32 %v1131_v23, %v1074_v46  ;;  %v1139_v63 = vmul.f32 %v1131_v23, %v1077_v57  ;;  %v1138_v0 = vmul.f32 %v1131_v23, %v2090_v53 }
 0x3c4   :  { %v1155_v6 = vadd.f32 %v2127_v54, %v1134_v40  ;;  %v1153_v10 = vadd.f32 %v2127_v54, %v1132_v55  ;;  %v1156_v14 = vadd.f32 %v2127_v54, %v1135_v62  ;;  %v1154_v61 = vadd.f32 %v2127_v54, %v1133_v32  ;;  %v2173_v55 = vld [vmem:[#allocation2 + $0x150] ss:$0 sm:$0xff] }
 0x3c5   :  { %v1158_v5 = vadd.f32 %v2127_v54, %v1137_v7  ;;  %v1157_v29 = vadd.f32 %v2127_v54, %v1136_v9  ;;  %v1160_v21 = vadd.f32 %v2127_v54, %v1139_v63  ;;  %v1159_v13 = vadd.f32 %v2127_v54, %v1138_v0 }
 0x3c6   :  { %v1171_v51 = vmax.f32 %v1155_v6, 0.0  ;;  %v1169_v1 = vmax.f32 %v1153_v10, 0.0  ;;  %v1172_v16 = vmax.f32 %v1156_v14, 0.0  ;;  %v1170_v18 = vmax.f32 %v1154_v61, 0.0 }
 0x3c7   :  { %v1174_v3 = vmax.f32 %v1158_v5, 0.0  ;;  %v1173_v19 = vmax.f32 %v1157_v29, 0.0  ;;  %v1141_v53 = vmul.f32 %v1131_v23, %v2096_v59  ;;  %v1140_v24 = vmul.f32 %v1131_v23, %v2092_v4 }
 0x3c8   :  { %v1193_v46 = vmul.f32 %v2133_v58, %v1171_v51  ;;  %v1191_v49 = vmul.f32 %v2133_v58, %v1169_v1  ;;  %v1194_v56 = vmul.f32 %v2133_v58, %v1172_v16  ;;  %v1192_v57 = vmul.f32 %v2133_v58, %v1170_v18 }
 0x3c9   :  { %v1196_v8 = vmul.f32 %v2133_v58, %v1174_v3  ;;  %v1195_v25 = vmul.f32 %v2133_v58, %v1173_v19  ;;  %v1176_v11 = vmax.f32 %v1160_v21, 0.0  ;;  %v1175_v28 = vmax.f32 %v1159_v13, 0.0 }
 0x3ca   :  { %1211 = vadd.xlane.f32.xlu1 %v1193_v46  ;;  %1207 = vadd.xlane.f32.xlu0 %v1191_v49  ;;  %v1162_v30 = vadd.f32 %v2127_v54, %v1141_v53  ;;  %v1161_v31 = vadd.f32 %v2127_v54, %v1140_v24  ;;  %v1143_v33 = vmul.f32 %v1131_v23, %v2102_v22 }
 0x3cb   :  { %v1142_v34 = vmul.f32 %v1131_v23, %v2098_v2  ;;  %v1198_v4 = vmul.f32 %v2133_v58, %v1176_v11  ;;  %v1197_v59 = vmul.f32 %v2133_v58, %v1175_v28  ;;  %v1145_v35 = vmul.f32 %v1131_v23, %v2110_v60 }
 0x3cc   :  { %v1144_v17 = vmul.f32 %v1131_v23, %v2106_v27  ;;  %v1178_v38 = vmax.f32 %v1162_v30, 0.0  ;;  %v1177_v39 = vmax.f32 %v1161_v31, 0.0  ;;  %v1164_v41 = vadd.f32 %v2127_v54, %v1143_v33 }
 0x3cd   :  { %v1163_v26 = vadd.f32 %v2127_v54, %v1142_v34  ;;  %v1146_v2 = vmul.f32 %v1131_v23, %v2114_v12  ;;  %v1166_v22 = vadd.f32 %v2127_v54, %v1145_v35  ;;  %v1147_v43 = vmul.f32 %v1131_v23, %v2118_v15 }
 0x3ce   :  { %1213 = vadd.xlane.f32.xlu1 %v1194_v56  ;;  %1209 = vadd.xlane.f32.xlu0 %v1192_v57  ;;  %v1165_v42 = vadd.f32 %v2127_v54, %v1144_v17  ;;  %v1200_v60 = vmul.f32 %v2133_v58, %v1178_v38  ;;  %v1199_v27 = vmul.f32 %v2133_v58, %v1177_v39  ;;  %v1180_v44 = vmax.f32 %v1164_v41, 0.0 }
 0x3cf   :  { %v1179_v45 = vmax.f32 %v1163_v26, 0.0  ;;  %v1168_v48 = vadd.f32 %v2127_v54, %v1147_v43  ;;  %v1167_v47 = vadd.f32 %v2127_v54, %v1146_v2  ;;  %v1182_v52 = vmax.f32 %v1166_v22, 0.0 }
 0x3d0   :  { %v1202_v12 = vmul.f32 %v2133_v58, %v1180_v44  ;;  %v1181_v36 = vmax.f32 %v1165_v42, 0.0 }
 0x3d1   :  { %v1201_v50 = vmul.f32 %v2133_v58, %v1179_v45  ;;  %v1204_v15 = vmul.f32 %v2133_v58, %v1182_v52  ;;  %v1184_v20 = vmax.f32 %v1168_v48, 0.0  ;;  %v1183_v23 = vmax.f32 %v1167_v47, 0.0 }
 0x3d2   :  { %1217 = vadd.xlane.f32.xlu1 %v1196_v8  ;;  %1215 = vadd.xlane.f32.xlu0 %v1195_v25  ;;  %v1203_v37 = vmul.f32 %v2133_v58, %v1181_v36 }
 0x3d3   :  { %v1206_v40 = vmul.f32 %v2133_v58, %v1184_v20  ;;  %v1205_v54 = vmul.f32 %v2133_v58, %v1183_v23 }
 0x3d6   :  { %1221 = vadd.xlane.f32.xlu1 %v1198_v4  ;;  %1219 = vadd.xlane.f32.xlu0 %v1197_v59 }
 0x3da   :  { %1225 = vadd.xlane.f32.xlu1 %v1200_v60  ;;  %1223 = vadd.xlane.f32.xlu0 %v1199_v27 }
 0x3de   :  { %1229 = vadd.xlane.f32.xlu1 %v1202_v12  ;;  %1227 = vadd.xlane.f32.xlu0 %v1201_v50 }
 0x3e2   :  { %1233 = vadd.xlane.f32.xlu1 %v1204_v15  ;;  %1231 = vadd.xlane.f32.xlu0 %v1203_v37 }
 0x3e6   :  { %1237 = vadd.xlane.f32.xlu1 %v1206_v40  ;;  %1235 = vadd.xlane.f32.xlu0 %v1205_v54 }
 0x453   :  { %v1212_v62 = vpop.xlane.xlu1 %1211  ;;  %v1208_v32 = vpop.xlane.xlu0 %1207 }
 0x454   :  { %v1245_v7 = vadd.f32 %v2173_v55, %v1212_v62  ;;  %v1243_v9 = vadd.f32 %v2173_v55, %v1208_v32 }
 0x456   :  { %v1416_v6 = vmul.f32 -1.442695, %v1245_v7  ;;  %v1414_v10 = vmul.f32 -1.442695, %v1243_v9 }
 0x457   :  { %v1214_v14 = vpop.xlane.xlu1 %1213  ;;  %v1210_v61 = vpop.xlane.xlu0 %1209 }
 0x458   :  { %1704 = vpow2.f32 %v1416_v6  ;;  %v1246_v51 = vadd.f32 %v2173_v55, %v1214_v14  ;;  %v1244_v1 = vadd.f32 %v2173_v55, %v1210_v61 }
 0x459   :  { %1706 = vpow2.f32 %v1414_v10 }
 0x45a   :  { %v1417_v58 = vmul.f32 -1.442695, %v1246_v51  ;;  %v1415_v5 = vmul.f32 -1.442695, %v1244_v1 }
 0x45b   :  { %v1218_v29 = vpop.xlane.xlu1 %1217  ;;  %v1216_v63 = vpop.xlane.xlu0 %1215 }
 0x45c   :  { %1708 = vpow2.f32 %v1417_v58  ;;  %v1248_v0 = vadd.f32 %v2173_v55, %v1218_v29  ;;  %v1247_v46 = vadd.f32 %v2173_v55, %v1216_v63 }
 0x45d   :  { %1710 = vpow2.f32 %v1415_v5 }
 0x45e   :  { %v1419_v49 = vmul.f32 -1.442695, %v1248_v0  ;;  %v1418_v16 = vmul.f32 -1.442695, %v1247_v46 }
 0x45f   :  { %v1222_v18 = vpop.xlane.xlu1 %1221  ;;  %v1220_v3 = vpop.xlane.xlu0 %1219 }
 0x460   :  { %1712 = vpow2.f32 %v1419_v49  ;;  %v1250_v19 = vadd.f32 %v2173_v55, %v1222_v18  ;;  %v1249_v21 = vadd.f32 %v2173_v55, %v1220_v3 }
 0x461   :  { %1714 = vpow2.f32 %v1418_v16 }
 0x462   :  { %v1421_v13 = vmul.f32 -1.442695, %v1250_v19  ;;  %v1420_v56 = vmul.f32 -1.442695, %v1249_v21 }
 0x463   :  { %v1226_v57 = vpop.xlane.xlu1 %1225  ;;  %v1224_v53 = vpop.xlane.xlu0 %1223 }
 0x464   :  { %1716 = vpow2.f32 %v1421_v13  ;;  %v1252_v24 = vadd.f32 %v2173_v55, %v1226_v57  ;;  %v1251_v8 = vadd.f32 %v2173_v55, %v1224_v53 }
 0x465   :  { %v1705_v25 = vpop.eup %1704  ;;  %1718 = vpow2.f32 %v1420_v56 }
 0x466   :  { %v1707_v11 = vpop.eup %1706  ;;  %v1309_v28 = vadd.f32 1.0, %v1705_v25  ;;  %v1423_v30 = vmul.f32 -1.442695, %v1252_v24  ;;  %v1422_v33 = vmul.f32 -1.442695, %v1251_v8 }
 0x467   :  { %v1307_v31 = vadd.f32 1.0, %v1707_v11  ;;  %v1230_v34 = vpop.xlane.xlu1 %1229  ;;  %v1228_v4 = vpop.xlane.xlu0 %1227 }
 0x468   :  { %1720 = vrcp.f32 %v1309_v28  ;;  %v1254_v59 = vadd.f32 %v2173_v55, %v1230_v34  ;;  %v1253_v35 = vadd.f32 %v2173_v55, %v1228_v4 }
 0x469   :  { %v1709_v17 = vpop.eup %1708  ;;  %1722 = vrcp.f32 %v1307_v31 }
 0x46a   :  { %v1711_v38 = vpop.eup %1710  ;;  %v1310_v39 = vadd.f32 1.0, %v1709_v17  ;;  %1724 = vpow2.f32 %v1423_v30  ;;  %v1425_v41 = vmul.f32 -1.442695, %v1254_v59  ;;  %v1424_v2 = vmul.f32 -1.442695, %v1253_v35 }
 0x46b   :  { %v1308_v26 = vadd.f32 1.0, %v1711_v38  ;;  %1726 = vpow2.f32 %v1422_v33  ;;  %v1234_v22 = vpop.xlane.xlu1 %1233  ;;  %v1232_v42 = vpop.xlane.xlu0 %1231 }
 0x46c   :  { %1728 = vrcp.f32 %v1310_v39  ;;  %v1256_v43 = vadd.f32 %v2173_v55, %v1234_v22  ;;  %v1255_v60 = vadd.f32 %v2173_v55, %v1232_v42 }
 0x46d   :  { %v1713_v27 = vpop.eup %1712  ;;  %1730 = vrcp.f32 %v1308_v26 }
 0x46e   :  { %v1715_v44 = vpop.eup %1714  ;;  %v1312_v45 = vadd.f32 1.0, %v1713_v27  ;;  %1732 = vpow2.f32 %v1425_v41  ;;  %v1427_v48 = vmul.f32 -1.442695, %v1256_v43  ;;  %v1426_v12 = vmul.f32 -1.442695, %v1255_v60 }
 0x46f   :  { %v1311_v47 = vadd.f32 1.0, %v1715_v44  ;;  %1734 = vpow2.f32 %v1424_v2  ;;  %v1238_v50 = vpop.xlane.xlu1 %1237  ;;  %v1236_v52 = vpop.xlane.xlu0 %1235 }
 0x470   :  { %1736 = vrcp.f32 %v1312_v45  ;;  %v1258_v36 = vadd.f32 %v2173_v55, %v1238_v50  ;;  %v1257_v15 = vadd.f32 %v2173_v55, %v1236_v52 }
 0x471   :  { %v1717_v37 = vpop.eup %1716  ;;  %1738 = vrcp.f32 %v1311_v47 }
 0x472   :  { %v1719_v20 = vpop.eup %1718  ;;  %v1314_v23 = vadd.f32 1.0, %v1717_v37  ;;  %1740 = vpow2.f32 %v1427_v48  ;;  %v1429_v40 = vmul.f32 -1.442695, %v1258_v36  ;;  %v1428_v62 = vmul.f32 -1.442695, %v1257_v15 }
 0x473   :  { %v1313_v54 = vadd.f32 1.0, %v1719_v20  ;;  %1742 = vpow2.f32 %v1426_v12 }
 0x474   :  { %1744 = vrcp.f32 %v1314_v23 }
 0x475   :  { %v1721_v32 = vpop.eup %1720  ;;  %1746 = vrcp.f32 %v1313_v54 }
 0x476   :  { %v1723_v7 = vpop.eup %1722  ;;  %1358 = vst.msk [vmem:[%s2258_s3 + $0x10] sm:$0xff] %vm1355_vm2, %v1721_v32  ;;  %1748 = vpow2.f32 %v1429_v40 }
 0x477   :  { %v1725_v55 = vpop.eup %1724  ;;  %1356 = vst.msk [vmem:[%s2258_s3] sm:$0xff] %vm1355_vm2, %v1723_v7  ;;  %1750 = vpow2.f32 %v1428_v62 }
 0x478   :  { %v1727_v9 = vpop.eup %1726  ;;  %v1316_v6 = vadd.f32 1.0, %v1725_v55 }
 0x479   :  { %v1729_v10 = vpop.eup %1728  ;;  %v1315_v14 = vadd.f32 1.0, %v1727_v9 }
 0x47a   :  { %v1731_v61 = vpop.eup %1730  ;;  %1359 = vst.msk [vmem:[%s2258_s3 + $0x18] sm:$0xff] %vm1355_vm2, %v1729_v10  ;;  %1752 = vrcp.f32 %v1316_v6 }
 0x47b   :  { %v1733_v51 = vpop.eup %1732  ;;  %1357 = vst.msk [vmem:[%s2258_s3 + $0x8] sm:$0xff] %vm1355_vm2, %v1731_v61  ;;  %1754 = vrcp.f32 %v1315_v14 }
 0x47c   :  { %v1735_v1 = vpop.eup %1734  ;;  %v1318_v58 = vadd.f32 1.0, %v1733_v51 }
 0x47d   :  { %v1737_v5 = vpop.eup %1736  ;;  %v1317_v29 = vadd.f32 1.0, %v1735_v1 }
 0x47e   :  { %v1739_v63 = vpop.eup %1738  ;;  %1361 = vst.msk [vmem:[%s2258_s3 + $0x28] sm:$0xff] %vm1355_vm2, %v1737_v5  ;;  %1756 = vrcp.f32 %v1318_v58 }
 0x47f   :  { %v1741_v0 = vpop.eup %1740  ;;  %1360 = vst.msk [vmem:[%s2258_s3 + $0x20] sm:$0xff] %vm1355_vm2, %v1739_v63  ;;  %1758 = vrcp.f32 %v1317_v29 }
 0x480   :  { %v1743_v46 = vpop.eup %1742  ;;  %v1320_v49 = vadd.f32 1.0, %v1741_v0 }
 0x481   :  { %v1745_v16 = vpop.eup %1744  ;;  %v1319_v18 = vadd.f32 1.0, %v1743_v46 }
 0x482   :  { %v1747_v3 = vpop.eup %1746  ;;  %1363 = vst.msk [vmem:[%s2258_s3 + $0x38] sm:$0xff] %vm1355_vm2, %v1745_v16  ;;  %1760 = vrcp.f32 %v1320_v49 }
 0x483   :  { %v1749_v19 = vpop.eup %1748  ;;  %1362 = vst.msk [vmem:[%s2258_s3 + $0x30] sm:$0xff] %vm1355_vm2, %v1747_v3  ;;  %1762 = vrcp.f32 %v1319_v18 }
 0x484   :  { %v1751_v21 = vpop.eup %1750  ;;  %v1322_v13 = vadd.f32 1.0, %v1749_v19 }
 0x485   :  { %v1321_v56 = vadd.f32 1.0, %v1751_v21 }
 0x486   :  { %1764 = vrcp.f32 %v1322_v13 }
 0x487   :  { %v1753_v57 = vpop.eup %1752  ;;  %1766 = vrcp.f32 %v1321_v56 }
 0x488   :  { %v1755_v53 = vpop.eup %1754  ;;  %1365 = vst.msk [vmem:[%s2258_s3 + $0x48] sm:$0xff] %vm1355_vm2, %v1753_v57 }
 0x489   :  { %1364 = vst.msk [vmem:[%s2258_s3 + $0x40] sm:$0xff] %vm1355_vm2, %v1755_v53 }
 0x48b   :  { %v1757_v24 = vpop.eup %1756 }
 0x48c   :  { %v1759_v8 = vpop.eup %1758  ;;  %1367 = vst.msk [vmem:[%s2258_s3 + $0x58] sm:$0xff] %vm1355_vm2, %v1757_v24 }
 0x48d   :  { %1366 = vst.msk [vmem:[%s2258_s3 + $0x50] sm:$0xff] %vm1355_vm2, %v1759_v8 }
 0x48f   :  { %v1761_v25 = vpop.eup %1760 }
 0x490   :  { %v1763_v11 = vpop.eup %1762  ;;  %1369 = vst.msk [vmem:[%s2258_s3 + $0x68] sm:$0xff] %vm1355_vm2, %v1761_v25 }
 0x491   :  { %1368 = vst.msk [vmem:[%s2258_s3 + $0x60] sm:$0xff] %vm1355_vm2, %v1763_v11 }
 0x493   :  { %v1765_v28 = vpop.eup %1764 }
 0x494   :  { %v1767_v30 = vpop.eup %1766  ;;  %1371 = vst.msk [vmem:[%s2258_s3 + $0x78] sm:$0xff] %vm1355_vm2, %v1765_v28 }
 0x495   :  { %1370 = vst.msk [vmem:[%s2258_s3 + $0x70] sm:$0xff] %vm1355_vm2, %v1767_v30 }
 0x496   :  { %1376 = vsyncpa [#allocation3], 1 }

</bundles_post_ra>
